<compile_context>
chip_gen: v5e
topology: v5e:2x2
jax: 0.10.0
libtpu: 0.0.40
codegen_flags: <defaults>
</compile_context>

<pallas_src>
import functools

import jax
import jax.numpy as jnp
from jax.experimental import pallas as pl
from jax.experimental.pallas import tpu as pltpu

GW = 128          # lane width each LSTM gate block is padded to (one vreg)
BIAS_ROWS = 8     # sublane-aligned slab region holding the two bias rows


# ----------------------------------------------------------------------------
# Fused Pallas kernel (factory closes over all static configuration)
# ----------------------------------------------------------------------------
def _make_encoder_kernel(L, L_pad, E, H, alpha, mix_plan):
    n_mix = len(mix_plan)
    alpha = float(alpha)

    def kernel(tok_ref, wemb_ref, pemb_ref, premb_ref, vemb_ref, params_ref,
               o_ref, x_buf, mix_buf, sems):
        # ---- 0) in-kernel embedding gather: token rows + annotation rows ---
        copies = []
        for i in range(L):
            cp = pltpu.make_async_copy(
                wemb_ref.at[pl.ds(tok_ref[i], 1)], x_buf.at[i:i + 1],
                sems.at[i])
            cp.start()
            copies.append(cp)
        tables = (pemb_ref, premb_ref, vemb_ref)
        for m, (_, tbl, row) in enumerate(mix_plan):       # static rows
            cp = pltpu.make_async_copy(
                tables[tbl].at[row:row + 1], mix_buf.at[m:m + 1],
                sems.at[L + m])
            cp.start()
            copies.append(cp)
        if L_pad > L:   # keep the per-column L2 norm exact
            x_buf[L:L_pad, :] = jnp.zeros((L_pad - L, E), jnp.float32)
        for cp in copies:
            cp.wait()

        # ---- 1) alpha-mix of annotation embeddings (static token rows) -----
        x = x_buf[...]                                      # (L_pad, E)
        if n_mix:
            rid = jax.lax.broadcasted_iota(jnp.int32, (L_pad, E), 0)
            for m, (dst, _, _) in enumerate(mix_plan):
                mixed = alpha * x + (1.0 - alpha) * mix_buf[m:m + 1, :]
                x = jnp.where(rid == dst, mixed, x)

        # ---- 2) F.normalize(p=2, dim=1) over the sequence axis + ReLU ------
        # approx=False keeps the result bit-faithful to the torch divide
        # (approx reciprocal's ~2^-12 error would still be tiny, but exact is
        #  free at this size).
        denom = jnp.maximum(jnp.sqrt(jnp.sum(x * x, axis=0, keepdims=True)),
                            1e-12)
        x_n = jnp.maximum(x * pl.reciprocal(denom, approx=False), 0.0)

        # ---- 3) static, sublane-aligned views into the packed param slab ---
        b0 = params_ref[0:1, :]                             # (1, 6*GW)
        b1 = params_ref[1:2, :]
        w0 = params_ref[BIAS_ROWS:BIAS_ROWS + E, :]         # (E,   6*GW)
        w1 = params_ref[BIAS_ROWS + E:BIAS_ROWS + E + GW, :]  # (GW, 6*GW)

        def one_dir(g):
            # gate blocks lane-aligned at multiples of GW=128 -> no relayout
            i_g = jax.nn.sigmoid(g[:, 0 * GW:1 * GW])
            g_g = jnp.tanh(g[:, 1 * GW:2 * GW])
            o_g = jax.nn.sigmoid(g[:, 2 * GW:3 * GW])
            # h = o * tanh(c), c = f*c0 + i*g = i*g (c0 == 0, forget stripped);
            # padded lanes: 0.5 * tanh(0.5 * 0) == 0 exactly.
            return o_g * jnp.tanh(i_g * g_g)

        # ---- 4) layer 0: one 6-gate matmul for both directions, all rows ---
        g0 = jnp.dot(x_n, w0, preferred_element_type=jnp.float32) + b0
        hf0 = one_dir(g0[:, 0:3 * GW])                      # (L_pad, GW)
        hb0 = one_dir(g0[:, 3 * GW:6 * GW])                 # (L_pad, GW)

        # ---- 5) layer 1: dropout+skip glue == 2*relu; row 0 carries the bwd
        #        stream, every other row the fwd stream (pure-VPU select) ----
        row = jax.lax.broadcasted_iota(jnp.int32, (L_pad, GW), 0)
        in1 = 2.0 * jnp.maximum(jnp.where(row == 0, hb0, hf0), 0.0)
        g1 = jnp.dot(in1, w1, preferred_element_type=jnp.float32) + b1
        hf1 = one_dir(g1[:, 0:3 * GW])
        hb1 = one_dir(g1[:, 3 * GW:6 * GW])

        # ---- 6) final relu + two lane-dense row stores ----------------------
        o_ref[0:1, :] = jnp.maximum(hf1[L - 1:L, :], 0.0)   # fwd, last token
        o_ref[1:2, :] = jnp.maximum(hb1[0:1, :], 0.0)       # bwd, token 0

    return kernel


def encoder_fused(params, token_ids, hidden_dim, mix_plan, alpha):
    L = int(token_ids.shape[0])
    E = int(params["word_embeds"].shape[1])
    H = int(hidden_dim)
    assert L >= 2, "need at least 2 tokens (distinct fwd/bwd output rows)"
    assert E % 8 == 0 and H <= GW
    L_pad = max(8, ((L + 7) // 8) * 8)
    n_mix = len(mix_plan)

    kernel = _make_encoder_kernel(L, L_pad, E, H, alpha, mix_plan)
    out = pl.pallas_call(
        kernel,
        out_shape=jax.ShapeDtypeStruct((2, GW), jnp.float32),
        in_specs=[
            pl.BlockSpec(memory_space=pltpu.MemorySpace.SMEM),   # token ids
            pl.BlockSpec(memory_space=pl.ANY),                   # word_embeds
            pl.BlockSpec(memory_space=pl.ANY),                   # position_embeds
            pl.BlockSpec(memory_space=pl.ANY),                   # predicate_embeds
            pl.BlockSpec(memory_space=pl.ANY),                   # verschil_embeds
            pl.BlockSpec(memory_space=pltpu.MemorySpace.VMEM),   # packed slab
        ],
        out_specs=pl.BlockSpec(memory_space=pltpu.MemorySpace.VMEM),
        scratch_shapes=[
            pltpu.VMEM((L_pad, E), jnp.float32),                 # gathered x
            pltpu.VMEM((max(n_mix, 1), E), jnp.float32),         # mix rows
            pltpu.SemaphoreType.DMA((L + max(n_mix, 1),)),
        ],
    )(token_ids.astype(jnp.int32),
      params["word_embeds"], params["position_embeds"],
      params["predicate_embeds"], params["verschil_embeds"],
      params["params_slab"])
    return out[:, :H].reshape(2 * H)


# ----------------------------------------------------------------------------
# JAX wrapper (annotation indices are static Python ints from text parsing)
# ----------------------------------------------------------------------------
# TODO(synk): AutoTokenizer + string parsing of positions/verbs/times/verschil
# annotations is host-side text processing with no Pallas equivalent; the
# parsed integer indices/values are taken as (static) inputs here.
def _build_mix_plan(positions_idx, positions_val, verb_idx, time_idx,
                    verschil_idx, verschil_val):
    plan = []  # (dst_token_row, table_id, table_row); tables: pos / pred / verschil
    for tok_i, pos_v in zip(positions_idx, positions_val):
        plan.append((int(tok_i), 0, int(pos_v) + 100))
    for tok_i in verb_idx:
        plan.append((int(tok_i), 1, 0))
    for tok_i in time_idx:
        plan.append((int(tok_i), 1, 1))
    for tok_i, val in zip(verschil_idx, verschil_val):
        plan.append((int(tok_i), 2, int(val)))
    return tuple(plan)


@functools.partial(jax.jit, static_argnames=(
    "hidden_dim", "positions_idx", "positions_val", "verb_idx", "time_idx",
    "verschil_idx", "verschil_val", "alpha"))
def encoder_forward(params, token_ids, hidden_dim, positions_idx,
                    positions_val, verb_idx, time_idx, verschil_idx,
                    verschil_val, alpha):
    mix_plan = _build_mix_plan(positions_idx, positions_val, verb_idx,
                               time_idx, verschil_idx, verschil_val)
    # gather + alpha-mix + normalize + ReLU + 2 bi-LSTM layers + skip + final
    # relu/concat, all inside ONE pallas_call.
    return encoder_fused(params, token_ids, hidden_dim, mix_plan, alpha)


# ----------------------------------------------------------------------------
# Deterministic parameter construction (synthetic; mirrors __init__ shapes)
# ----------------------------------------------------------------------------
def _prep_direction(w_ih, b_ih, b_hh, H):
    # PyTorch gate order [i, f, g, o]; drop the dead forget gate (c0 == 0),
    # fold b_ih + b_hh (h0 == 0 kills w_hh), pad each kept gate block to GW
    # lanes (zeros) and transpose so the kernel does x @ W directly.
    in_dim = w_ih.shape[1]
    b = b_ih + b_hh
    w_blocks, b_blocks = [], []
    for g in (0, 2, 3):                                   # keep i, g, o
        wp = jnp.zeros((GW, in_dim), jnp.float32).at[:H].set(w_ih[g * H:(g + 1) * H])
        bp = jnp.zeros((GW,), jnp.float32).at[:H].set(b[g * H:(g + 1) * H])
        w_blocks.append(wp)
        b_blocks.append(bp)
    return jnp.concatenate(w_blocks, 0).T, jnp.concatenate(b_blocks, 0)


def _pack_layer(fwd_raw, bwd_raw, H):
    wf, bf = _prep_direction(*fwd_raw, H)
    wb, bb = _prep_direction(*bwd_raw, H)
    # column layout: [fwd i | fwd g | fwd o | bwd i | bwd g | bwd o], GW each
    return jnp.concatenate([wf, wb], 1), jnp.concatenate([bf, bb], 0)


def _pack_slab(raw, E, H):
    w0, b0 = _pack_layer(raw["fwd0"], raw["bwd0"], H)     # (E, 6GW), (6GW,)
    w1, b1 = _pack_layer(raw["fwd1"], raw["bwd1"], H)     # (H, 6GW), (6GW,)
    slab = jnp.zeros((BIAS_ROWS + E + GW, 6 * GW), jnp.float32)
    slab = slab.at[0].set(b0).at[1].set(b1)
    slab = slab.at[BIAS_ROWS:BIAS_ROWS + E].set(w0)
    slab = slab.at[BIAS_ROWS + E:BIAS_ROWS + E + H].set(w1)   # rows >= H stay 0
    return slab


def make_params(key, vocab, E, H):
    ks = jax.random.split(key, 8)
    bound_e = (6.0 / (vocab + E)) ** 0.5                  # xavier_uniform
    bound_h = 1.0 / (H ** 0.5)                            # PyTorch LSTM default

    def lstm_raw(k, in_dim):
        k1, k2, k3 = jax.random.split(k, 3)
        w_ih = jax.random.uniform(k1, (4 * H, in_dim), jnp.float32, -bound_h, bound_h)
        b_ih = jax.random.uniform(k2, (4 * H,), jnp.float32, -bound_h, bound_h)
        b_hh = jax.random.uniform(k3, (4 * H,), jnp.float32, -bound_h, bound_h)
        return w_ih, b_ih, b_hh

    raw = {"fwd0": lstm_raw(ks[0], E), "bwd0": lstm_raw(ks[1], E),
           "fwd1": lstm_raw(ks[2], H), "bwd1": lstm_raw(ks[3], H)}

    params = {
        "word_embeds": jax.random.uniform(ks[4], (vocab, E), jnp.float32, -bound_e, bound_e),
        "position_embeds": jax.random.normal(ks[5], (200, E), jnp.float32),
        "predicate_embeds": jax.random.normal(ks[6], (2, E), jnp.float32),
        "verschil_embeds": jax.random.normal(ks[7], (86, E), jnp.float32),
        "params_slab": _pack_slab(raw, E, H),
    }
    return params, raw


# ----------------------------------------------------------------------------
# Pure-JAX reference of the ORIGINAL (unfused, 4-gate, flipped) math
# ----------------------------------------------------------------------------
def _apply_alpha_mix(params, x, positions_idx, positions_val, verb_idx,
                     time_idx, verschil_idx, verschil_val, alpha):
    def mix(x, idx, vec):
        return x.at[idx].set(alpha * x[idx] + (1.0 - alpha) * vec)

    for tok_i, pos_v in zip(positions_idx, positions_val):
        x = mix(x, tok_i, params["position_embeds"][pos_v + 100])
    for tok_i in verb_idx:
        x = mix(x, tok_i, params["predicate_embeds"][0])
    for tok_i in time_idx:
        x = mix(x, tok_i, params["predicate_embeds"][1])
    for tok_i, val in zip(verschil_idx, verschil_val):
        x = mix(x, tok_i, params["verschil_embeds"][val])
    return x


def encoder_reference(raw, x):
    def cell(xx, w_ih, b_ih, b_hh):
        H = w_ih.shape[0] // 4
        g = xx @ w_ih.T + (b_ih + b_hh)
        i = jax.nn.sigmoid(g[:, 0:H])
        f = jax.nn.sigmoid(g[:, H:2 * H])
        gg = jnp.tanh(g[:, 2 * H:3 * H])
        o = jax.nn.sigmoid(g[:, 3 * H:4 * H])
        c = f * 0.0 + i * gg
        return o * jnp.tanh(c)

    denom = jnp.maximum(jnp.sqrt(jnp.sum(x * x, axis=0, keepdims=True)), 1e-12)
    xn = jnp.maximum(x / denom, 0.0)
    xb = jnp.flip(xn, axis=0)
    of0 = cell(xn, *raw["fwd0"])
    ob0 = cell(xb, *raw["bwd0"])
    of1 = cell(2.0 * jnp.maximum(of0, 0.0), *raw["fwd1"])
    ob1 = cell(2.0 * jnp.maximum(ob0, 0.0), *raw["bwd1"])
    return jnp.concatenate(
        [jnp.maximum(of1[-1], 0.0), jnp.maximum(ob1[-1], 0.0)], axis=0)


if __name__ == "__main__":
    E = 32       # embedding_dim
    H = 32       # hidden_dim
    L = 8        # tokenized sequence length
    VOCAB = 128  # synthetic vocab (stand-in for distilroberta tokenizer vocab)
    ALPHA = 0.5

    key = jax.random.PRNGKey(0)
    kp, kt = jax.random.split(key)
    params, raw = make_params(kp, VOCAB, E, H)
    token_ids = jax.random.randint(kt, (L,), 0, VOCAB)

    # Deterministic stand-ins for the string-parsed annotations.
    positions_idx = (2,)
    positions_val = (5,)      # positionEmbeddings[5 + 100]
    verb_idx = (3,)           # predicateEmbeddings[0]
    time_idx = (4,)           # predicateEmbeddings[1]
    verschil_idx = (5,)
    verschil_val = (10,)      # verschil[10]

    out = encoder_forward(params, token_ids, hidden_dim=H,
                          positions_idx=positions_idx,
                          positions_val=positions_val,
                          verb_idx=verb_idx, time_idx=time_idx,
                          verschil_idx=verschil_idx,
                          verschil_val=verschil_val, alpha=ALPHA)
    out = jax.block_until_ready(out)
    assert out.shape == (2 * H,) and out.dtype == jnp.float32

    # Numeric sanity check against the unfused 4-gate flipped reference.
    x_mixed = _apply_alpha_mix(params, params["word_embeds"][token_ids],
                               positions_idx, positions_val, verb_idx,
                               time_idx, verschil_idx, verschil_val, ALPHA)
    ref = encoder_reference(raw, x_mixed)
    max_err = float(jnp.max(jnp.abs(out - ref)))
    assert max_err < 1e-3, f"mismatch vs reference: {max_err}"

    print("KERNEL_OK")
</pallas_src>

<mosaic_0001>
module attributes {stable_mosaic.version = 11 : i64} {
  func.func @kernel(%arg0: memref<8xi32, #tpu.memory_space<smem>>, %arg1: memref<128x32xf32, #tpu.memory_space<any>>, %arg2: memref<200x32xf32, #tpu.memory_space<any>>, %arg3: memref<2x32xf32, #tpu.memory_space<any>>, %arg4: memref<86x32xf32, #tpu.memory_space<any>>, %arg5: memref<168x768xf32, #tpu.memory_space<vmem>>, %arg6: memref<2x128xf32, #tpu.memory_space<vmem>>, %arg7: memref<8x32xf32, #tpu.memory_space<vmem>>, %arg8: memref<4x32xf32, #tpu.memory_space<vmem>>, %arg9: memref<12x!tpu.dma_semaphore, #tpu.memory_space<semaphore_mem>>) attributes {dimension_semantics = [], scalar_prefetch = 0 : i64, scratch_operands = 3 : i64, tpu.core_type = #tpu.core_type<tc>} {
    %c0 = arith.constant 0 : index
    %0 = memref.load %arg0[%c0] : memref<8xi32, #tpu.memory_space<smem>>
    %c0_i32 = arith.constant 0 : i32
    %c0_i32_0 = arith.constant 0 : i32
    %1 = tpu.memref_slice %arg1[%0, %c0_i32_0] : memref<128x32xf32, #tpu.memory_space<any>> -> memref<1x32xf32, #tpu.memory_space<any>>
    %c0_i32_1 = arith.constant 0 : i32
    %c0_i32_2 = arith.constant 0 : i32
    %2 = tpu.memref_slice %arg7[%c0_i32_1, %c0_i32_2] : memref<8x32xf32, #tpu.memory_space<vmem>> -> memref<1x32xf32, #tpu.memory_space<vmem>>
    %3 = tpu.memref_slice %arg9[%c0_i32] : memref<12x!tpu.dma_semaphore, #tpu.memory_space<semaphore_mem>> -> memref<1x!tpu.dma_semaphore, #tpu.memory_space<semaphore_mem>>
    %4 = tpu.memref_squeeze %3 : memref<1x!tpu.dma_semaphore, #tpu.memory_space<semaphore_mem>> -> memref<!tpu.dma_semaphore, #tpu.memory_space<semaphore_mem>>
    tpu.enqueue_dma source(%1 : memref<1x32xf32, #tpu.memory_space<any>>) target(%2 : memref<1x32xf32, #tpu.memory_space<vmem>>) target_semaphore(%4 : memref<!tpu.dma_semaphore, #tpu.memory_space<semaphore_mem>>)
    %c1 = arith.constant 1 : index
    %5 = memref.load %arg0[%c1] : memref<8xi32, #tpu.memory_space<smem>>
    %c1_i32 = arith.constant 1 : i32
    %c0_i32_3 = arith.constant 0 : i32
    %6 = tpu.memref_slice %arg1[%5, %c0_i32_3] : memref<128x32xf32, #tpu.memory_space<any>> -> memref<1x32xf32, #tpu.memory_space<any>>
    %c1_i32_4 = arith.constant 1 : i32
    %c0_i32_5 = arith.constant 0 : i32
    %7 = tpu.memref_slice %arg7[%c1_i32_4, %c0_i32_5] : memref<8x32xf32, #tpu.memory_space<vmem>> -> memref<1x32xf32, #tpu.memory_space<vmem>>
    %8 = tpu.memref_slice %arg9[%c1_i32] : memref<12x!tpu.dma_semaphore, #tpu.memory_space<semaphore_mem>> -> memref<1x!tpu.dma_semaphore, #tpu.memory_space<semaphore_mem>>
    %9 = tpu.memref_squeeze %8 : memref<1x!tpu.dma_semaphore, #tpu.memory_space<semaphore_mem>> -> memref<!tpu.dma_semaphore, #tpu.memory_space<semaphore_mem>>
    tpu.enqueue_dma source(%6 : memref<1x32xf32, #tpu.memory_space<any>>) target(%7 : memref<1x32xf32, #tpu.memory_space<vmem>>) target_semaphore(%9 : memref<!tpu.dma_semaphore, #tpu.memory_space<semaphore_mem>>)
    %c2 = arith.constant 2 : index
    %10 = memref.load %arg0[%c2] : memref<8xi32, #tpu.memory_space<smem>>
    %c2_i32 = arith.constant 2 : i32
    %c0_i32_6 = arith.constant 0 : i32
    %11 = tpu.memref_slice %arg1[%10, %c0_i32_6] : memref<128x32xf32, #tpu.memory_space<any>> -> memref<1x32xf32, #tpu.memory_space<any>>
    %c2_i32_7 = arith.constant 2 : i32
    %c0_i32_8 = arith.constant 0 : i32
    %12 = tpu.memref_slice %arg7[%c2_i32_7, %c0_i32_8] : memref<8x32xf32, #tpu.memory_space<vmem>> -> memref<1x32xf32, #tpu.memory_space<vmem>>
    %13 = tpu.memref_slice %arg9[%c2_i32] : memref<12x!tpu.dma_semaphore, #tpu.memory_space<semaphore_mem>> -> memref<1x!tpu.dma_semaphore, #tpu.memory_space<semaphore_mem>>
    %14 = tpu.memref_squeeze %13 : memref<1x!tpu.dma_semaphore, #tpu.memory_space<semaphore_mem>> -> memref<!tpu.dma_semaphore, #tpu.memory_space<semaphore_mem>>
    tpu.enqueue_dma source(%11 : memref<1x32xf32, #tpu.memory_space<any>>) target(%12 : memref<1x32xf32, #tpu.memory_space<vmem>>) target_semaphore(%14 : memref<!tpu.dma_semaphore, #tpu.memory_space<semaphore_mem>>)
    %c3 = arith.constant 3 : index
    %15 = memref.load %arg0[%c3] : memref<8xi32, #tpu.memory_space<smem>>
    %c3_i32 = arith.constant 3 : i32
    %c0_i32_9 = arith.constant 0 : i32
    %16 = tpu.memref_slice %arg1[%15, %c0_i32_9] : memref<128x32xf32, #tpu.memory_space<any>> -> memref<1x32xf32, #tpu.memory_space<any>>
    %c3_i32_10 = arith.constant 3 : i32
    %c0_i32_11 = arith.constant 0 : i32
    %17 = tpu.memref_slice %arg7[%c3_i32_10, %c0_i32_11] : memref<8x32xf32, #tpu.memory_space<vmem>> -> memref<1x32xf32, #tpu.memory_space<vmem>>
    %18 = tpu.memref_slice %arg9[%c3_i32] : memref<12x!tpu.dma_semaphore, #tpu.memory_space<semaphore_mem>> -> memref<1x!tpu.dma_semaphore, #tpu.memory_space<semaphore_mem>>
    %19 = tpu.memref_squeeze %18 : memref<1x!tpu.dma_semaphore, #tpu.memory_space<semaphore_mem>> -> memref<!tpu.dma_semaphore, #tpu.memory_space<semaphore_mem>>
    tpu.enqueue_dma source(%16 : memref<1x32xf32, #tpu.memory_space<any>>) target(%17 : memref<1x32xf32, #tpu.memory_space<vmem>>) target_semaphore(%19 : memref<!tpu.dma_semaphore, #tpu.memory_space<semaphore_mem>>)
    %c4 = arith.constant 4 : index
    %20 = memref.load %arg0[%c4] : memref<8xi32, #tpu.memory_space<smem>>
    %c4_i32 = arith.constant 4 : i32
    %c0_i32_12 = arith.constant 0 : i32
    %21 = tpu.memref_slice %arg1[%20, %c0_i32_12] : memref<128x32xf32, #tpu.memory_space<any>> -> memref<1x32xf32, #tpu.memory_space<any>>
    %c4_i32_13 = arith.constant 4 : i32
    %c0_i32_14 = arith.constant 0 : i32
    %22 = tpu.memref_slice %arg7[%c4_i32_13, %c0_i32_14] : memref<8x32xf32, #tpu.memory_space<vmem>> -> memref<1x32xf32, #tpu.memory_space<vmem>>
    %23 = tpu.memref_slice %arg9[%c4_i32] : memref<12x!tpu.dma_semaphore, #tpu.memory_space<semaphore_mem>> -> memref<1x!tpu.dma_semaphore, #tpu.memory_space<semaphore_mem>>
    %24 = tpu.memref_squeeze %23 : memref<1x!tpu.dma_semaphore, #tpu.memory_space<semaphore_mem>> -> memref<!tpu.dma_semaphore, #tpu.memory_space<semaphore_mem>>
    tpu.enqueue_dma source(%21 : memref<1x32xf32, #tpu.memory_space<any>>) target(%22 : memref<1x32xf32, #tpu.memory_space<vmem>>) target_semaphore(%24 : memref<!tpu.dma_semaphore, #tpu.memory_space<semaphore_mem>>)
    %c5 = arith.constant 5 : index
    %25 = memref.load %arg0[%c5] : memref<8xi32, #tpu.memory_space<smem>>
    %c5_i32 = arith.constant 5 : i32
    %c0_i32_15 = arith.constant 0 : i32
    %26 = tpu.memref_slice %arg1[%25, %c0_i32_15] : memref<128x32xf32, #tpu.memory_space<any>> -> memref<1x32xf32, #tpu.memory_space<any>>
    %c5_i32_16 = arith.constant 5 : i32
    %c0_i32_17 = arith.constant 0 : i32
    %27 = tpu.memref_slice %arg7[%c5_i32_16, %c0_i32_17] : memref<8x32xf32, #tpu.memory_space<vmem>> -> memref<1x32xf32, #tpu.memory_space<vmem>>
    %28 = tpu.memref_slice %arg9[%c5_i32] : memref<12x!tpu.dma_semaphore, #tpu.memory_space<semaphore_mem>> -> memref<1x!tpu.dma_semaphore, #tpu.memory_space<semaphore_mem>>
    %29 = tpu.memref_squeeze %28 : memref<1x!tpu.dma_semaphore, #tpu.memory_space<semaphore_mem>> -> memref<!tpu.dma_semaphore, #tpu.memory_space<semaphore_mem>>
    tpu.enqueue_dma source(%26 : memref<1x32xf32, #tpu.memory_space<any>>) target(%27 : memref<1x32xf32, #tpu.memory_space<vmem>>) target_semaphore(%29 : memref<!tpu.dma_semaphore, #tpu.memory_space<semaphore_mem>>)
    %c6 = arith.constant 6 : index
    %30 = memref.load %arg0[%c6] : memref<8xi32, #tpu.memory_space<smem>>
    %c6_i32 = arith.constant 6 : i32
    %c0_i32_18 = arith.constant 0 : i32
    %31 = tpu.memref_slice %arg1[%30, %c0_i32_18] : memref<128x32xf32, #tpu.memory_space<any>> -> memref<1x32xf32, #tpu.memory_space<any>>
    %c6_i32_19 = arith.constant 6 : i32
    %c0_i32_20 = arith.constant 0 : i32
    %32 = tpu.memref_slice %arg7[%c6_i32_19, %c0_i32_20] : memref<8x32xf32, #tpu.memory_space<vmem>> -> memref<1x32xf32, #tpu.memory_space<vmem>>
    %33 = tpu.memref_slice %arg9[%c6_i32] : memref<12x!tpu.dma_semaphore, #tpu.memory_space<semaphore_mem>> -> memref<1x!tpu.dma_semaphore, #tpu.memory_space<semaphore_mem>>
    %34 = tpu.memref_squeeze %33 : memref<1x!tpu.dma_semaphore, #tpu.memory_space<semaphore_mem>> -> memref<!tpu.dma_semaphore, #tpu.memory_space<semaphore_mem>>
    tpu.enqueue_dma source(%31 : memref<1x32xf32, #tpu.memory_space<any>>) target(%32 : memref<1x32xf32, #tpu.memory_space<vmem>>) target_semaphore(%34 : memref<!tpu.dma_semaphore, #tpu.memory_space<semaphore_mem>>)
    %c7 = arith.constant 7 : index
    %35 = memref.load %arg0[%c7] : memref<8xi32, #tpu.memory_space<smem>>
    %c7_i32 = arith.constant 7 : i32
    %c0_i32_21 = arith.constant 0 : i32
    %36 = tpu.memref_slice %arg1[%35, %c0_i32_21] : memref<128x32xf32, #tpu.memory_space<any>> -> memref<1x32xf32, #tpu.memory_space<any>>
    %c7_i32_22 = arith.constant 7 : i32
    %c0_i32_23 = arith.constant 0 : i32
    %37 = tpu.memref_slice %arg7[%c7_i32_22, %c0_i32_23] : memref<8x32xf32, #tpu.memory_space<vmem>> -> memref<1x32xf32, #tpu.memory_space<vmem>>
    %38 = tpu.memref_slice %arg9[%c7_i32] : memref<12x!tpu.dma_semaphore, #tpu.memory_space<semaphore_mem>> -> memref<1x!tpu.dma_semaphore, #tpu.memory_space<semaphore_mem>>
    %39 = tpu.memref_squeeze %38 : memref<1x!tpu.dma_semaphore, #tpu.memory_space<semaphore_mem>> -> memref<!tpu.dma_semaphore, #tpu.memory_space<semaphore_mem>>
    tpu.enqueue_dma source(%36 : memref<1x32xf32, #tpu.memory_space<any>>) target(%37 : memref<1x32xf32, #tpu.memory_space<vmem>>) target_semaphore(%39 : memref<!tpu.dma_semaphore, #tpu.memory_space<semaphore_mem>>)
    %c8_i32 = arith.constant 8 : i32
    %c105_i32 = arith.constant 105 : i32
    %c0_i32_24 = arith.constant 0 : i32
    %40 = tpu.memref_slice %arg2[%c105_i32, %c0_i32_24] : memref<200x32xf32, #tpu.memory_space<any>> -> memref<1x32xf32, #tpu.memory_space<any>>
    %c0_i32_25 = arith.constant 0 : i32
    %c0_i32_26 = arith.constant 0 : i32
    %41 = tpu.memref_slice %arg8[%c0_i32_25, %c0_i32_26] : memref<4x32xf32, #tpu.memory_space<vmem>> -> memref<1x32xf32, #tpu.memory_space<vmem>>
    %42 = tpu.memref_slice %arg9[%c8_i32] : memref<12x!tpu.dma_semaphore, #tpu.memory_space<semaphore_mem>> -> memref<1x!tpu.dma_semaphore, #tpu.memory_space<semaphore_mem>>
    %43 = tpu.memref_squeeze %42 : memref<1x!tpu.dma_semaphore, #tpu.memory_space<semaphore_mem>> -> memref<!tpu.dma_semaphore, #tpu.memory_space<semaphore_mem>>
    tpu.enqueue_dma source(%40 : memref<1x32xf32, #tpu.memory_space<any>>) target(%41 : memref<1x32xf32, #tpu.memory_space<vmem>>) target_semaphore(%43 : memref<!tpu.dma_semaphore, #tpu.memory_space<semaphore_mem>>)
    %c9_i32 = arith.constant 9 : i32
    %c0_i32_27 = arith.constant 0 : i32
    %c0_i32_28 = arith.constant 0 : i32
    %44 = tpu.memref_slice %arg3[%c0_i32_27, %c0_i32_28] : memref<2x32xf32, #tpu.memory_space<any>> -> memref<1x32xf32, #tpu.memory_space<any>>
    %c1_i32_29 = arith.constant 1 : i32
    %c0_i32_30 = arith.constant 0 : i32
    %45 = tpu.memref_slice %arg8[%c1_i32_29, %c0_i32_30] : memref<4x32xf32, #tpu.memory_space<vmem>> -> memref<1x32xf32, #tpu.memory_space<vmem>>
    %46 = tpu.memref_slice %arg9[%c9_i32] : memref<12x!tpu.dma_semaphore, #tpu.memory_space<semaphore_mem>> -> memref<1x!tpu.dma_semaphore, #tpu.memory_space<semaphore_mem>>
    %47 = tpu.memref_squeeze %46 : memref<1x!tpu.dma_semaphore, #tpu.memory_space<semaphore_mem>> -> memref<!tpu.dma_semaphore, #tpu.memory_space<semaphore_mem>>
    tpu.enqueue_dma source(%44 : memref<1x32xf32, #tpu.memory_space<any>>) target(%45 : memref<1x32xf32, #tpu.memory_space<vmem>>) target_semaphore(%47 : memref<!tpu.dma_semaphore, #tpu.memory_space<semaphore_mem>>)
    %c10_i32 = arith.constant 10 : i32
    %c1_i32_31 = arith.constant 1 : i32
    %c0_i32_32 = arith.constant 0 : i32
    %48 = tpu.memref_slice %arg3[%c1_i32_31, %c0_i32_32] : memref<2x32xf32, #tpu.memory_space<any>> -> memref<1x32xf32, #tpu.memory_space<any>>
    %c2_i32_33 = arith.constant 2 : i32
    %c0_i32_34 = arith.constant 0 : i32
    %49 = tpu.memref_slice %arg8[%c2_i32_33, %c0_i32_34] : memref<4x32xf32, #tpu.memory_space<vmem>> -> memref<1x32xf32, #tpu.memory_space<vmem>>
    %50 = tpu.memref_slice %arg9[%c10_i32] : memref<12x!tpu.dma_semaphore, #tpu.memory_space<semaphore_mem>> -> memref<1x!tpu.dma_semaphore, #tpu.memory_space<semaphore_mem>>
    %51 = tpu.memref_squeeze %50 : memref<1x!tpu.dma_semaphore, #tpu.memory_space<semaphore_mem>> -> memref<!tpu.dma_semaphore, #tpu.memory_space<semaphore_mem>>
    tpu.enqueue_dma source(%48 : memref<1x32xf32, #tpu.memory_space<any>>) target(%49 : memref<1x32xf32, #tpu.memory_space<vmem>>) target_semaphore(%51 : memref<!tpu.dma_semaphore, #tpu.memory_space<semaphore_mem>>)
    %c11_i32 = arith.constant 11 : i32
    %c10_i32_35 = arith.constant 10 : i32
    %c0_i32_36 = arith.constant 0 : i32
    %52 = tpu.memref_slice %arg4[%c10_i32_35, %c0_i32_36] : memref<86x32xf32, #tpu.memory_space<any>> -> memref<1x32xf32, #tpu.memory_space<any>>
    %c3_i32_37 = arith.constant 3 : i32
    %c0_i32_38 = arith.constant 0 : i32
    %53 = tpu.memref_slice %arg8[%c3_i32_37, %c0_i32_38] : memref<4x32xf32, #tpu.memory_space<vmem>> -> memref<1x32xf32, #tpu.memory_space<vmem>>
    %54 = tpu.memref_slice %arg9[%c11_i32] : memref<12x!tpu.dma_semaphore, #tpu.memory_space<semaphore_mem>> -> memref<1x!tpu.dma_semaphore, #tpu.memory_space<semaphore_mem>>
    %55 = tpu.memref_squeeze %54 : memref<1x!tpu.dma_semaphore, #tpu.memory_space<semaphore_mem>> -> memref<!tpu.dma_semaphore, #tpu.memory_space<semaphore_mem>>
    tpu.enqueue_dma source(%52 : memref<1x32xf32, #tpu.memory_space<any>>) target(%53 : memref<1x32xf32, #tpu.memory_space<vmem>>) target_semaphore(%55 : memref<!tpu.dma_semaphore, #tpu.memory_space<semaphore_mem>>)
    %c0_i32_39 = arith.constant 0 : i32
    %c0_i32_40 = arith.constant 0 : i32
    %56 = tpu.memref_slice %arg1[%0, %c0_i32_40] : memref<128x32xf32, #tpu.memory_space<any>> -> memref<1x32xf32, #tpu.memory_space<any>>
    %c0_i32_41 = arith.constant 0 : i32
    %c0_i32_42 = arith.constant 0 : i32
    %57 = tpu.memref_slice %arg7[%c0_i32_41, %c0_i32_42] : memref<8x32xf32, #tpu.memory_space<vmem>> -> memref<1x32xf32, #tpu.memory_space<vmem>>
    %58 = tpu.memref_slice %arg9[%c0_i32_39] : memref<12x!tpu.dma_semaphore, #tpu.memory_space<semaphore_mem>> -> memref<1x!tpu.dma_semaphore, #tpu.memory_space<semaphore_mem>>
    %59 = tpu.memref_squeeze %58 : memref<1x!tpu.dma_semaphore, #tpu.memory_space<semaphore_mem>> -> memref<!tpu.dma_semaphore, #tpu.memory_space<semaphore_mem>>
    tpu.wait_dma2 semaphore(%59 : memref<!tpu.dma_semaphore, #tpu.memory_space<semaphore_mem>>) src(%56 : memref<1x32xf32, #tpu.memory_space<any>>) dst(%57 : memref<1x32xf32, #tpu.memory_space<vmem>>)
    %c1_i32_43 = arith.constant 1 : i32
    %c0_i32_44 = arith.constant 0 : i32
    %60 = tpu.memref_slice %arg1[%5, %c0_i32_44] : memref<128x32xf32, #tpu.memory_space<any>> -> memref<1x32xf32, #tpu.memory_space<any>>
    %c1_i32_45 = arith.constant 1 : i32
    %c0_i32_46 = arith.constant 0 : i32
    %61 = tpu.memref_slice %arg7[%c1_i32_45, %c0_i32_46] : memref<8x32xf32, #tpu.memory_space<vmem>> -> memref<1x32xf32, #tpu.memory_space<vmem>>
    %62 = tpu.memref_slice %arg9[%c1_i32_43] : memref<12x!tpu.dma_semaphore, #tpu.memory_space<semaphore_mem>> -> memref<1x!tpu.dma_semaphore, #tpu.memory_space<semaphore_mem>>
    %63 = tpu.memref_squeeze %62 : memref<1x!tpu.dma_semaphore, #tpu.memory_space<semaphore_mem>> -> memref<!tpu.dma_semaphore, #tpu.memory_space<semaphore_mem>>
    tpu.wait_dma2 semaphore(%63 : memref<!tpu.dma_semaphore, #tpu.memory_space<semaphore_mem>>) src(%60 : memref<1x32xf32, #tpu.memory_space<any>>) dst(%61 : memref<1x32xf32, #tpu.memory_space<vmem>>)
    %c2_i32_47 = arith.constant 2 : i32
    %c0_i32_48 = arith.constant 0 : i32
    %64 = tpu.memref_slice %arg1[%10, %c0_i32_48] : memref<128x32xf32, #tpu.memory_space<any>> -> memref<1x32xf32, #tpu.memory_space<any>>
    %c2_i32_49 = arith.constant 2 : i32
    %c0_i32_50 = arith.constant 0 : i32
    %65 = tpu.memref_slice %arg7[%c2_i32_49, %c0_i32_50] : memref<8x32xf32, #tpu.memory_space<vmem>> -> memref<1x32xf32, #tpu.memory_space<vmem>>
    %66 = tpu.memref_slice %arg9[%c2_i32_47] : memref<12x!tpu.dma_semaphore, #tpu.memory_space<semaphore_mem>> -> memref<1x!tpu.dma_semaphore, #tpu.memory_space<semaphore_mem>>
    %67 = tpu.memref_squeeze %66 : memref<1x!tpu.dma_semaphore, #tpu.memory_space<semaphore_mem>> -> memref<!tpu.dma_semaphore, #tpu.memory_space<semaphore_mem>>
    tpu.wait_dma2 semaphore(%67 : memref<!tpu.dma_semaphore, #tpu.memory_space<semaphore_mem>>) src(%64 : memref<1x32xf32, #tpu.memory_space<any>>) dst(%65 : memref<1x32xf32, #tpu.memory_space<vmem>>)
    %c3_i32_51 = arith.constant 3 : i32
    %c0_i32_52 = arith.constant 0 : i32
    %68 = tpu.memref_slice %arg1[%15, %c0_i32_52] : memref<128x32xf32, #tpu.memory_space<any>> -> memref<1x32xf32, #tpu.memory_space<any>>
    %c3_i32_53 = arith.constant 3 : i32
    %c0_i32_54 = arith.constant 0 : i32
    %69 = tpu.memref_slice %arg7[%c3_i32_53, %c0_i32_54] : memref<8x32xf32, #tpu.memory_space<vmem>> -> memref<1x32xf32, #tpu.memory_space<vmem>>
    %70 = tpu.memref_slice %arg9[%c3_i32_51] : memref<12x!tpu.dma_semaphore, #tpu.memory_space<semaphore_mem>> -> memref<1x!tpu.dma_semaphore, #tpu.memory_space<semaphore_mem>>
    %71 = tpu.memref_squeeze %70 : memref<1x!tpu.dma_semaphore, #tpu.memory_space<semaphore_mem>> -> memref<!tpu.dma_semaphore, #tpu.memory_space<semaphore_mem>>
    tpu.wait_dma2 semaphore(%71 : memref<!tpu.dma_semaphore, #tpu.memory_space<semaphore_mem>>) src(%68 : memref<1x32xf32, #tpu.memory_space<any>>) dst(%69 : memref<1x32xf32, #tpu.memory_space<vmem>>)
    %c4_i32_55 = arith.constant 4 : i32
    %c0_i32_56 = arith.constant 0 : i32
    %72 = tpu.memref_slice %arg1[%20, %c0_i32_56] : memref<128x32xf32, #tpu.memory_space<any>> -> memref<1x32xf32, #tpu.memory_space<any>>
    %c4_i32_57 = arith.constant 4 : i32
    %c0_i32_58 = arith.constant 0 : i32
    %73 = tpu.memref_slice %arg7[%c4_i32_57, %c0_i32_58] : memref<8x32xf32, #tpu.memory_space<vmem>> -> memref<1x32xf32, #tpu.memory_space<vmem>>
    %74 = tpu.memref_slice %arg9[%c4_i32_55] : memref<12x!tpu.dma_semaphore, #tpu.memory_space<semaphore_mem>> -> memref<1x!tpu.dma_semaphore, #tpu.memory_space<semaphore_mem>>
    %75 = tpu.memref_squeeze %74 : memref<1x!tpu.dma_semaphore, #tpu.memory_space<semaphore_mem>> -> memref<!tpu.dma_semaphore, #tpu.memory_space<semaphore_mem>>
    tpu.wait_dma2 semaphore(%75 : memref<!tpu.dma_semaphore, #tpu.memory_space<semaphore_mem>>) src(%72 : memref<1x32xf32, #tpu.memory_space<any>>) dst(%73 : memref<1x32xf32, #tpu.memory_space<vmem>>)
    %c5_i32_59 = arith.constant 5 : i32
    %c0_i32_60 = arith.constant 0 : i32
    %76 = tpu.memref_slice %arg1[%25, %c0_i32_60] : memref<128x32xf32, #tpu.memory_space<any>> -> memref<1x32xf32, #tpu.memory_space<any>>
    %c5_i32_61 = arith.constant 5 : i32
    %c0_i32_62 = arith.constant 0 : i32
    %77 = tpu.memref_slice %arg7[%c5_i32_61, %c0_i32_62] : memref<8x32xf32, #tpu.memory_space<vmem>> -> memref<1x32xf32, #tpu.memory_space<vmem>>
    %78 = tpu.memref_slice %arg9[%c5_i32_59] : memref<12x!tpu.dma_semaphore, #tpu.memory_space<semaphore_mem>> -> memref<1x!tpu.dma_semaphore, #tpu.memory_space<semaphore_mem>>
    %79 = tpu.memref_squeeze %78 : memref<1x!tpu.dma_semaphore, #tpu.memory_space<semaphore_mem>> -> memref<!tpu.dma_semaphore, #tpu.memory_space<semaphore_mem>>
    tpu.wait_dma2 semaphore(%79 : memref<!tpu.dma_semaphore, #tpu.memory_space<semaphore_mem>>) src(%76 : memref<1x32xf32, #tpu.memory_space<any>>) dst(%77 : memref<1x32xf32, #tpu.memory_space<vmem>>)
    %c6_i32_63 = arith.constant 6 : i32
    %c0_i32_64 = arith.constant 0 : i32
    %80 = tpu.memref_slice %arg1[%30, %c0_i32_64] : memref<128x32xf32, #tpu.memory_space<any>> -> memref<1x32xf32, #tpu.memory_space<any>>
    %c6_i32_65 = arith.constant 6 : i32
    %c0_i32_66 = arith.constant 0 : i32
    %81 = tpu.memref_slice %arg7[%c6_i32_65, %c0_i32_66] : memref<8x32xf32, #tpu.memory_space<vmem>> -> memref<1x32xf32, #tpu.memory_space<vmem>>
    %82 = tpu.memref_slice %arg9[%c6_i32_63] : memref<12x!tpu.dma_semaphore, #tpu.memory_space<semaphore_mem>> -> memref<1x!tpu.dma_semaphore, #tpu.memory_space<semaphore_mem>>
    %83 = tpu.memref_squeeze %82 : memref<1x!tpu.dma_semaphore, #tpu.memory_space<semaphore_mem>> -> memref<!tpu.dma_semaphore, #tpu.memory_space<semaphore_mem>>
    tpu.wait_dma2 semaphore(%83 : memref<!tpu.dma_semaphore, #tpu.memory_space<semaphore_mem>>) src(%80 : memref<1x32xf32, #tpu.memory_space<any>>) dst(%81 : memref<1x32xf32, #tpu.memory_space<vmem>>)
    %c7_i32_67 = arith.constant 7 : i32
    %c0_i32_68 = arith.constant 0 : i32
    %84 = tpu.memref_slice %arg1[%35, %c0_i32_68] : memref<128x32xf32, #tpu.memory_space<any>> -> memref<1x32xf32, #tpu.memory_space<any>>
    %c7_i32_69 = arith.constant 7 : i32
    %c0_i32_70 = arith.constant 0 : i32
    %85 = tpu.memref_slice %arg7[%c7_i32_69, %c0_i32_70] : memref<8x32xf32, #tpu.memory_space<vmem>> -> memref<1x32xf32, #tpu.memory_space<vmem>>
    %86 = tpu.memref_slice %arg9[%c7_i32_67] : memref<12x!tpu.dma_semaphore, #tpu.memory_space<semaphore_mem>> -> memref<1x!tpu.dma_semaphore, #tpu.memory_space<semaphore_mem>>
    %87 = tpu.memref_squeeze %86 : memref<1x!tpu.dma_semaphore, #tpu.memory_space<semaphore_mem>> -> memref<!tpu.dma_semaphore, #tpu.memory_space<semaphore_mem>>
    tpu.wait_dma2 semaphore(%87 : memref<!tpu.dma_semaphore, #tpu.memory_space<semaphore_mem>>) src(%84 : memref<1x32xf32, #tpu.memory_space<any>>) dst(%85 : memref<1x32xf32, #tpu.memory_space<vmem>>)
    %c8_i32_71 = arith.constant 8 : i32
    %c105_i32_72 = arith.constant 105 : i32
    %c0_i32_73 = arith.constant 0 : i32
    %88 = tpu.memref_slice %arg2[%c105_i32_72, %c0_i32_73] : memref<200x32xf32, #tpu.memory_space<any>> -> memref<1x32xf32, #tpu.memory_space<any>>
    %c0_i32_74 = arith.constant 0 : i32
    %c0_i32_75 = arith.constant 0 : i32
    %89 = tpu.memref_slice %arg8[%c0_i32_74, %c0_i32_75] : memref<4x32xf32, #tpu.memory_space<vmem>> -> memref<1x32xf32, #tpu.memory_space<vmem>>
    %90 = tpu.memref_slice %arg9[%c8_i32_71] : memref<12x!tpu.dma_semaphore, #tpu.memory_space<semaphore_mem>> -> memref<1x!tpu.dma_semaphore, #tpu.memory_space<semaphore_mem>>
    %91 = tpu.memref_squeeze %90 : memref<1x!tpu.dma_semaphore, #tpu.memory_space<semaphore_mem>> -> memref<!tpu.dma_semaphore, #tpu.memory_space<semaphore_mem>>
    tpu.wait_dma2 semaphore(%91 : memref<!tpu.dma_semaphore, #tpu.memory_space<semaphore_mem>>) src(%88 : memref<1x32xf32, #tpu.memory_space<any>>) dst(%89 : memref<1x32xf32, #tpu.memory_space<vmem>>)
    %c9_i32_76 = arith.constant 9 : i32
    %c0_i32_77 = arith.constant 0 : i32
    %c0_i32_78 = arith.constant 0 : i32
    %92 = tpu.memref_slice %arg3[%c0_i32_77, %c0_i32_78] : memref<2x32xf32, #tpu.memory_space<any>> -> memref<1x32xf32, #tpu.memory_space<any>>
    %c1_i32_79 = arith.constant 1 : i32
    %c0_i32_80 = arith.constant 0 : i32
    %93 = tpu.memref_slice %arg8[%c1_i32_79, %c0_i32_80] : memref<4x32xf32, #tpu.memory_space<vmem>> -> memref<1x32xf32, #tpu.memory_space<vmem>>
    %94 = tpu.memref_slice %arg9[%c9_i32_76] : memref<12x!tpu.dma_semaphore, #tpu.memory_space<semaphore_mem>> -> memref<1x!tpu.dma_semaphore, #tpu.memory_space<semaphore_mem>>
    %95 = tpu.memref_squeeze %94 : memref<1x!tpu.dma_semaphore, #tpu.memory_space<semaphore_mem>> -> memref<!tpu.dma_semaphore, #tpu.memory_space<semaphore_mem>>
    tpu.wait_dma2 semaphore(%95 : memref<!tpu.dma_semaphore, #tpu.memory_space<semaphore_mem>>) src(%92 : memref<1x32xf32, #tpu.memory_space<any>>) dst(%93 : memref<1x32xf32, #tpu.memory_space<vmem>>)
    %c10_i32_81 = arith.constant 10 : i32
    %c1_i32_82 = arith.constant 1 : i32
    %c0_i32_83 = arith.constant 0 : i32
    %96 = tpu.memref_slice %arg3[%c1_i32_82, %c0_i32_83] : memref<2x32xf32, #tpu.memory_space<any>> -> memref<1x32xf32, #tpu.memory_space<any>>
    %c2_i32_84 = arith.constant 2 : i32
    %c0_i32_85 = arith.constant 0 : i32
    %97 = tpu.memref_slice %arg8[%c2_i32_84, %c0_i32_85] : memref<4x32xf32, #tpu.memory_space<vmem>> -> memref<1x32xf32, #tpu.memory_space<vmem>>
    %98 = tpu.memref_slice %arg9[%c10_i32_81] : memref<12x!tpu.dma_semaphore, #tpu.memory_space<semaphore_mem>> -> memref<1x!tpu.dma_semaphore, #tpu.memory_space<semaphore_mem>>
    %99 = tpu.memref_squeeze %98 : memref<1x!tpu.dma_semaphore, #tpu.memory_space<semaphore_mem>> -> memref<!tpu.dma_semaphore, #tpu.memory_space<semaphore_mem>>
    tpu.wait_dma2 semaphore(%99 : memref<!tpu.dma_semaphore, #tpu.memory_space<semaphore_mem>>) src(%96 : memref<1x32xf32, #tpu.memory_space<any>>) dst(%97 : memref<1x32xf32, #tpu.memory_space<vmem>>)
    %c11_i32_86 = arith.constant 11 : i32
    %c10_i32_87 = arith.constant 10 : i32
    %c0_i32_88 = arith.constant 0 : i32
    %100 = tpu.memref_slice %arg4[%c10_i32_87, %c0_i32_88] : memref<86x32xf32, #tpu.memory_space<any>> -> memref<1x32xf32, #tpu.memory_space<any>>
    %c3_i32_89 = arith.constant 3 : i32
    %c0_i32_90 = arith.constant 0 : i32
    %101 = tpu.memref_slice %arg8[%c3_i32_89, %c0_i32_90] : memref<4x32xf32, #tpu.memory_space<vmem>> -> memref<1x32xf32, #tpu.memory_space<vmem>>
    %102 = tpu.memref_slice %arg9[%c11_i32_86] : memref<12x!tpu.dma_semaphore, #tpu.memory_space<semaphore_mem>> -> memref<1x!tpu.dma_semaphore, #tpu.memory_space<semaphore_mem>>
    %103 = tpu.memref_squeeze %102 : memref<1x!tpu.dma_semaphore, #tpu.memory_space<semaphore_mem>> -> memref<!tpu.dma_semaphore, #tpu.memory_space<semaphore_mem>>
    tpu.wait_dma2 semaphore(%103 : memref<!tpu.dma_semaphore, #tpu.memory_space<semaphore_mem>>) src(%100 : memref<1x32xf32, #tpu.memory_space<any>>) dst(%101 : memref<1x32xf32, #tpu.memory_space<vmem>>)
    %c0_91 = arith.constant 0 : index
    %c0_92 = arith.constant 0 : index
    %104 = vector.load %arg7[%c0_91, %c0_92] : memref<8x32xf32, #tpu.memory_space<vmem>>, vector<8x32xf32>
    %105 = tpu.iota {dimensions = array<i32: 0>} : vector<8x32xi32>
    %cst = arith.constant 5.000000e-01 : f32
    %106 = vector.broadcast %cst : f32 to vector<8x32xf32>
    %107 = arith.mulf %106, %104 : vector<8x32xf32>
    %c0_93 = arith.constant 0 : index
    %c0_94 = arith.constant 0 : index
    %108 = vector.load %arg8[%c0_93, %c0_94] : memref<4x32xf32, #tpu.memory_space<vmem>>, vector<1x32xf32>
    %cst_95 = arith.constant 5.000000e-01 : f32
    %109 = vector.broadcast %cst_95 : f32 to vector<1x32xf32>
    %110 = arith.mulf %109, %108 : vector<1x32xf32>
    %111 = vector.broadcast %110 : vector<1x32xf32> to vector<8x32xf32>
    %112 = arith.addf %107, %111 : vector<8x32xf32>
    %c2_i32_96 = arith.constant 2 : i32
    %113 = vector.broadcast %c2_i32_96 : i32 to vector<8x32xi32>
    %114 = arith.cmpi eq, %105, %113 : vector<8x32xi32>
    %115 = arith.select %114, %112, %104 : vector<8x32xi1>, vector<8x32xf32>
    %cst_97 = arith.constant 5.000000e-01 : f32
    %116 = vector.broadcast %cst_97 : f32 to vector<8x32xf32>
    %117 = arith.mulf %116, %115 : vector<8x32xf32>
    %c1_98 = arith.constant 1 : index
    %c0_99 = arith.constant 0 : index
    %118 = vector.load %arg8[%c1_98, %c0_99] : memref<4x32xf32, #tpu.memory_space<vmem>>, vector<1x32xf32>
    %cst_100 = arith.constant 5.000000e-01 : f32
    %119 = vector.broadcast %cst_100 : f32 to vector<1x32xf32>
    %120 = arith.mulf %119, %118 : vector<1x32xf32>
    %121 = vector.broadcast %120 : vector<1x32xf32> to vector<8x32xf32>
    %122 = arith.addf %117, %121 : vector<8x32xf32>
    %c3_i32_101 = arith.constant 3 : i32
    %123 = vector.broadcast %c3_i32_101 : i32 to vector<8x32xi32>
    %124 = arith.cmpi eq, %105, %123 : vector<8x32xi32>
    %125 = arith.select %124, %122, %115 : vector<8x32xi1>, vector<8x32xf32>
    %cst_102 = arith.constant 5.000000e-01 : f32
    %126 = vector.broadcast %cst_102 : f32 to vector<8x32xf32>
    %127 = arith.mulf %126, %125 : vector<8x32xf32>
    %c2_103 = arith.constant 2 : index
    %c0_104 = arith.constant 0 : index
    %128 = vector.load %arg8[%c2_103, %c0_104] : memref<4x32xf32, #tpu.memory_space<vmem>>, vector<1x32xf32>
    %cst_105 = arith.constant 5.000000e-01 : f32
    %129 = vector.broadcast %cst_105 : f32 to vector<1x32xf32>
    %130 = arith.mulf %129, %128 : vector<1x32xf32>
    %131 = vector.broadcast %130 : vector<1x32xf32> to vector<8x32xf32>
    %132 = arith.addf %127, %131 : vector<8x32xf32>
    %c4_i32_106 = arith.constant 4 : i32
    %133 = vector.broadcast %c4_i32_106 : i32 to vector<8x32xi32>
    %134 = arith.cmpi eq, %105, %133 : vector<8x32xi32>
    %135 = arith.select %134, %132, %125 : vector<8x32xi1>, vector<8x32xf32>
    %cst_107 = arith.constant 5.000000e-01 : f32
    %136 = vector.broadcast %cst_107 : f32 to vector<8x32xf32>
    %137 = arith.mulf %136, %135 : vector<8x32xf32>
    %c3_108 = arith.constant 3 : index
    %c0_109 = arith.constant 0 : index
    %138 = vector.load %arg8[%c3_108, %c0_109] : memref<4x32xf32, #tpu.memory_space<vmem>>, vector<1x32xf32>
    %cst_110 = arith.constant 5.000000e-01 : f32
    %139 = vector.broadcast %cst_110 : f32 to vector<1x32xf32>
    %140 = arith.mulf %139, %138 : vector<1x32xf32>
    %141 = vector.broadcast %140 : vector<1x32xf32> to vector<8x32xf32>
    %142 = arith.addf %137, %141 : vector<8x32xf32>
    %c5_i32_111 = arith.constant 5 : i32
    %143 = vector.broadcast %c5_i32_111 : i32 to vector<8x32xi32>
    %144 = arith.cmpi eq, %105, %143 : vector<8x32xi32>
    %145 = arith.select %144, %142, %135 : vector<8x32xi1>, vector<8x32xf32>
    %146 = arith.mulf %145, %145 : vector<8x32xf32>
    %cst_112 = arith.constant dense<0.000000e+00> : vector<32xf32>
    %147 = vector.multi_reduction <add>, %146, %cst_112 [0] : vector<8x32xf32> to vector<32xf32>
    %148 = vector.shape_cast %147 : vector<32xf32> to vector<1x32xf32>
    %149 = math.sqrt %148 : vector<1x32xf32>
    %cst_113 = arith.constant 9.99999996E-13 : f32
    %150 = vector.broadcast %cst_113 : f32 to vector<1x32xf32>
    %151 = arith.maximumf %149, %150 : vector<1x32xf32>
    %152 = tpu.reciprocal %151 : vector<1x32xf32> -> vector<1x32xf32>
    %153 = vector.broadcast %152 : vector<1x32xf32> to vector<8x32xf32>
    %154 = arith.mulf %145, %153 : vector<8x32xf32>
    %cst_114 = arith.constant 0.000000e+00 : f32
    %155 = vector.broadcast %cst_114 : f32 to vector<8x32xf32>
    %156 = arith.maximumf %154, %155 : vector<8x32xf32>
    %c0_115 = arith.constant 0 : index
    %c0_116 = arith.constant 0 : index
    %157 = vector.load %arg5[%c0_115, %c0_116] : memref<168x768xf32, #tpu.memory_space<vmem>>, vector<1x768xf32>
    %c1_117 = arith.constant 1 : index
    %c0_118 = arith.constant 0 : index
    %158 = vector.load %arg5[%c1_117, %c0_118] : memref<168x768xf32, #tpu.memory_space<vmem>>, vector<1x768xf32>
    %c8 = arith.constant 8 : index
    %c0_119 = arith.constant 0 : index
    %159 = vector.load %arg5[%c8, %c0_119] : memref<168x768xf32, #tpu.memory_space<vmem>>, vector<32x768xf32>
    %c40 = arith.constant 40 : index
    %c0_120 = arith.constant 0 : index
    %160 = vector.load %arg5[%c40, %c0_120] : memref<168x768xf32, #tpu.memory_space<vmem>>, vector<128x768xf32>
    %cst_121 = arith.constant dense<0.000000e+00> : vector<8x768xf32>
    %161 = tpu.matmul %156, %159, %cst_121 {dimension_numbers = #tpu.dot_dimension_numbers<[1], [0], [0], [1], [0, 0, 1, 1], [], []>} : vector<8x32xf32>, vector<32x768xf32>, vector<8x768xf32> -> vector<8x768xf32>
    %162 = vector.broadcast %157 : vector<1x768xf32> to vector<8x768xf32>
    %163 = arith.addf %161, %162 : vector<8x768xf32>
    %164 = vector.extract_strided_slice %163 {offsets = [0, 0], sizes = [8, 384], strides = [1, 1]} : vector<8x768xf32> to vector<8x384xf32>
    %165 = vector.extract_strided_slice %164 {offsets = [0, 0], sizes = [8, 128], strides = [1, 1]} : vector<8x384xf32> to vector<8x128xf32>
    %166 = arith.negf %165 : vector<8x128xf32>
    %167 = math.exp %166 : vector<8x128xf32>
    %cst_122 = arith.constant 1.000000e+00 : f32
    %168 = vector.broadcast %cst_122 : f32 to vector<8x128xf32>
    %169 = arith.addf %168, %167 : vector<8x128xf32>
    %170 = arith.divf %168, %169 : vector<8x128xf32>
    %171 = vector.extract_strided_slice %164 {offsets = [0, 128], sizes = [8, 128], strides = [1, 1]} : vector<8x384xf32> to vector<8x128xf32>
    %172 = math.tanh %171 : vector<8x128xf32>
    %173 = vector.extract_strided_slice %164 {offsets = [0, 256], sizes = [8, 128], strides = [1, 1]} : vector<8x384xf32> to vector<8x128xf32>
    %174 = arith.negf %173 : vector<8x128xf32>
    %175 = math.exp %174 : vector<8x128xf32>
    %cst_123 = arith.constant 1.000000e+00 : f32
    %176 = vector.broadcast %cst_123 : f32 to vector<8x128xf32>
    %177 = arith.addf %176, %175 : vector<8x128xf32>
    %178 = arith.divf %176, %177 : vector<8x128xf32>
    %179 = arith.mulf %170, %172 : vector<8x128xf32>
    %180 = math.tanh %179 : vector<8x128xf32>
    %181 = arith.mulf %178, %180 : vector<8x128xf32>
    %182 = vector.extract_strided_slice %163 {offsets = [0, 384], sizes = [8, 384], strides = [1, 1]} : vector<8x768xf32> to vector<8x384xf32>
    %183 = vector.extract_strided_slice %182 {offsets = [0, 0], sizes = [8, 128], strides = [1, 1]} : vector<8x384xf32> to vector<8x128xf32>
    %184 = arith.negf %183 : vector<8x128xf32>
    %185 = math.exp %184 : vector<8x128xf32>
    %cst_124 = arith.constant 1.000000e+00 : f32
    %186 = vector.broadcast %cst_124 : f32 to vector<8x128xf32>
    %187 = arith.addf %186, %185 : vector<8x128xf32>
    %188 = arith.divf %186, %187 : vector<8x128xf32>
    %189 = vector.extract_strided_slice %182 {offsets = [0, 128], sizes = [8, 128], strides = [1, 1]} : vector<8x384xf32> to vector<8x128xf32>
    %190 = math.tanh %189 : vector<8x128xf32>
    %191 = vector.extract_strided_slice %182 {offsets = [0, 256], sizes = [8, 128], strides = [1, 1]} : vector<8x384xf32> to vector<8x128xf32>
    %192 = arith.negf %191 : vector<8x128xf32>
    %193 = math.exp %192 : vector<8x128xf32>
    %cst_125 = arith.constant 1.000000e+00 : f32
    %194 = vector.broadcast %cst_125 : f32 to vector<8x128xf32>
    %195 = arith.addf %194, %193 : vector<8x128xf32>
    %196 = arith.divf %194, %195 : vector<8x128xf32>
    %197 = arith.mulf %188, %190 : vector<8x128xf32>
    %198 = math.tanh %197 : vector<8x128xf32>
    %199 = arith.mulf %196, %198 : vector<8x128xf32>
    %200 = tpu.iota {dimensions = array<i32: 0>} : vector<8x128xi32>
    %c0_i32_126 = arith.constant 0 : i32
    %201 = vector.broadcast %c0_i32_126 : i32 to vector<8x128xi32>
    %202 = arith.cmpi eq, %200, %201 : vector<8x128xi32>
    %203 = arith.select %202, %199, %181 : vector<8x128xi1>, vector<8x128xf32>
    %cst_127 = arith.constant 0.000000e+00 : f32
    %204 = vector.broadcast %cst_127 : f32 to vector<8x128xf32>
    %205 = arith.maximumf %203, %204 : vector<8x128xf32>
    %cst_128 = arith.constant 2.000000e+00 : f32
    %206 = vector.broadcast %cst_128 : f32 to vector<8x128xf32>
    %207 = arith.mulf %206, %205 : vector<8x128xf32>
    %cst_129 = arith.constant dense<0.000000e+00> : vector<8x768xf32>
    %208 = tpu.matmul %207, %160, %cst_129 {dimension_numbers = #tpu.dot_dimension_numbers<[1], [0], [0], [1], [0, 0, 1, 1], [], []>} : vector<8x128xf32>, vector<128x768xf32>, vector<8x768xf32> -> vector<8x768xf32>
    %209 = vector.broadcast %158 : vector<1x768xf32> to vector<8x768xf32>
    %210 = arith.addf %208, %209 : vector<8x768xf32>
    %211 = vector.extract_strided_slice %210 {offsets = [0, 0], sizes = [8, 384], strides = [1, 1]} : vector<8x768xf32> to vector<8x384xf32>
    %212 = vector.extract_strided_slice %211 {offsets = [0, 0], sizes = [8, 128], strides = [1, 1]} : vector<8x384xf32> to vector<8x128xf32>
    %213 = arith.negf %212 : vector<8x128xf32>
    %214 = math.exp %213 : vector<8x128xf32>
    %cst_130 = arith.constant 1.000000e+00 : f32
    %215 = vector.broadcast %cst_130 : f32 to vector<8x128xf32>
    %216 = arith.addf %215, %214 : vector<8x128xf32>
    %217 = arith.divf %215, %216 : vector<8x128xf32>
    %218 = vector.extract_strided_slice %211 {offsets = [0, 128], sizes = [8, 128], strides = [1, 1]} : vector<8x384xf32> to vector<8x128xf32>
    %219 = math.tanh %218 : vector<8x128xf32>
    %220 = vector.extract_strided_slice %211 {offsets = [0, 256], sizes = [8, 128], strides = [1, 1]} : vector<8x384xf32> to vector<8x128xf32>
    %221 = arith.negf %220 : vector<8x128xf32>
    %222 = math.exp %221 : vector<8x128xf32>
    %cst_131 = arith.constant 1.000000e+00 : f32
    %223 = vector.broadcast %cst_131 : f32 to vector<8x128xf32>
    %224 = arith.addf %223, %222 : vector<8x128xf32>
    %225 = arith.divf %223, %224 : vector<8x128xf32>
    %226 = arith.mulf %217, %219 : vector<8x128xf32>
    %227 = math.tanh %226 : vector<8x128xf32>
    %228 = arith.mulf %225, %227 : vector<8x128xf32>
    %229 = vector.extract_strided_slice %210 {offsets = [0, 384], sizes = [8, 384], strides = [1, 1]} : vector<8x768xf32> to vector<8x384xf32>
    %230 = vector.extract_strided_slice %229 {offsets = [0, 0], sizes = [8, 128], strides = [1, 1]} : vector<8x384xf32> to vector<8x128xf32>
    %231 = arith.negf %230 : vector<8x128xf32>
    %232 = math.exp %231 : vector<8x128xf32>
    %cst_132 = arith.constant 1.000000e+00 : f32
    %233 = vector.broadcast %cst_132 : f32 to vector<8x128xf32>
    %234 = arith.addf %233, %232 : vector<8x128xf32>
    %235 = arith.divf %233, %234 : vector<8x128xf32>
    %236 = vector.extract_strided_slice %229 {offsets = [0, 128], sizes = [8, 128], strides = [1, 1]} : vector<8x384xf32> to vector<8x128xf32>
    %237 = math.tanh %236 : vector<8x128xf32>
    %238 = vector.extract_strided_slice %229 {offsets = [0, 256], sizes = [8, 128], strides = [1, 1]} : vector<8x384xf32> to vector<8x128xf32>
    %239 = arith.negf %238 : vector<8x128xf32>
    %240 = math.exp %239 : vector<8x128xf32>
    %cst_133 = arith.constant 1.000000e+00 : f32
    %241 = vector.broadcast %cst_133 : f32 to vector<8x128xf32>
    %242 = arith.addf %241, %240 : vector<8x128xf32>
    %243 = arith.divf %241, %242 : vector<8x128xf32>
    %244 = arith.mulf %235, %237 : vector<8x128xf32>
    %245 = math.tanh %244 : vector<8x128xf32>
    %246 = arith.mulf %243, %245 : vector<8x128xf32>
    %247 = vector.extract_strided_slice %228 {offsets = [7, 0], sizes = [1, 128], strides = [1, 1]} : vector<8x128xf32> to vector<1x128xf32>
    %cst_134 = arith.constant 0.000000e+00 : f32
    %248 = vector.broadcast %cst_134 : f32 to vector<1x128xf32>
    %249 = arith.maximumf %247, %248 : vector<1x128xf32>
    %c0_135 = arith.constant 0 : index
    %c0_136 = arith.constant 0 : index
    %250 = vector.load %arg6[%c0_135, %c0_136] : memref<2x128xf32, #tpu.memory_space<vmem>>, vector<1x128xf32>
    tpu.vector_store %arg6[%c0_135, %c0_136], %249 {strides = array<i32>} : memref<2x128xf32, #tpu.memory_space<vmem>>, vector<1x128xf32>,
    %251 = vector.extract_strided_slice %246 {offsets = [0, 0], sizes = [1, 128], strides = [1, 1]} : vector<8x128xf32> to vector<1x128xf32>
    %cst_137 = arith.constant 0.000000e+00 : f32
    %252 = vector.broadcast %cst_137 : f32 to vector<1x128xf32>
    %253 = arith.maximumf %251, %252 : vector<1x128xf32>
    %c1_138 = arith.constant 1 : index
    %c0_139 = arith.constant 0 : index
    %254 = vector.load %arg6[%c1_138, %c0_139] : memref<2x128xf32, #tpu.memory_space<vmem>>, vector<1x128xf32>
    tpu.vector_store %arg6[%c1_138, %c0_139], %253 {strides = array<i32>} : memref<2x128xf32, #tpu.memory_space<vmem>>, vector<1x128xf32>,
    return
  }
}

</mosaic_0001>

<bundles_post_ra>
// kernel: encoder_forward.1
= control target key start
LH: loop header
LB: loop body
LE: loop exit
PB: predicated region body
PF: predicated region fallthrough
CT: control target
= control target key end

     0   :  { %11 = vsyncpa [#allocation7], 0  ;;  %s1635_s0 = inlined_call_operand.vmem [shape: s32[8], index: 0, kind: input, shape index: {}]   ;;  %s1636_s1 = inlined_call_operand.vmem [shape: f32[128,32], index: 1, kind: input, shape index: {}]   ;;  %s1637_s2 = inlined_call_operand.vmem [shape: f32[200,32], index: 2, kind: input, shape index: {}]   ;;  %s1638_s3 = inlined_call_operand.vmem [shape: f32[2,32], index: 3, kind: input, shape index: {}]   ;;  %s1639_s4 = inlined_call_operand.vmem [shape: f32[86,32], index: 4, kind: input, shape index: {}]   ;;  %s1640_s5 = inlined_call_operand.hbm [shape: f32[168,768], index: 5, kind: input, shape index: {}]   ;;  %s1641_s6 = inlined_call_operand.vmem [shape: f32[2,128], index: 6, kind: output, shape index: {}]  }
   0x1   :  { %s18_s23 = sshll.u32 %s1635_s0, 4  ;;  %s19_s23 = int_to_ptr.vmem [resolvable:$true] %s18_s23 }
   0x2   :  { %12 = vsyncpa [#allocation6], 0  ;;  %s26_s26 = sshll.u32 %s1640_s5, 4  ;;  %s1459_s27 = smov [#allocation5]   ;;  %s27_s26 = int_to_ptr.hbm [resolvable:$true] %s26_s26 }
   0x3   :  { %21 = dma.vmem_to_smem %s19_s23, 16, %s1459_s27, [#allocation7]  }
   0x4   :  { %s1460_s28 = smov [#allocation8]   ;;  %s1461_s30 = smov 768  }
   0x5   :  { %s28_s29 = sshll.u32 %s1460_s28, 4  ;;  %s1462_s7 = smov 48   ;;  %s29_s29 = int_to_ptr.vmem [resolvable:$true] %s28_s29 }
   0x6   :  { %34 = dma.hbm_to_vmem [thread:$0]  %s27_s26, 16128, %s29_s29, [#allocation6], %s1461_s30, %s1461_s30, %s1462_s7  }
   0x7   :  { %1431 = dma.done.wait [#allocation7], 16  }
   0x8   :  { %1432 = vsyncadd [#allocation7], 4294967280 }
   0x9   :  { %1433 = dma.done.wait [#allocation6], 16128  }
   0xa   :  { %1434 = vsyncadd [#allocation6], 4294951168 }
   0xb   :  { %43 = sfence }
   0xc   :  { %s44_s0 = sld [smem:[#allocation5]] }
  0x12   :  { %s45_s10 = scalar_lea.vmem %s1636_s1, %s44_s0 }
  0x13   :  { %v60_v0 = vld [vmem:[%s45_s10] sm:$0x1] }
  0x14   :  { %61 = vst [vmem:[#allocation2] sm:$0x1] %v60_v0 }
  0x15   :  { %79 = vsyncadd [#allocation4], 16  ;;  %s1303_s5 = sld [smem:[#allocation5 + $0x1]] }
  0x1b   :  { %s81_s13 = scalar_lea.vmem %s1636_s1, %s1303_s5 }
  0x1c   :  { %v98_v1 = vld [vmem:[%s81_s13] sm:$0x1] }
  0x1d   :  { %99 = vst [vmem:[#allocation2 + $0x1] sm:$0x1] %v98_v1 }
  0x1e   :  { %117 = vsyncadd [#allocation4 + $0x1], 16  ;;  %s1304_s14 = sld [smem:[#allocation5 + $0x2]] }
  0x24   :  { %s119_s17 = scalar_lea.vmem %s1636_s1, %s1304_s14 }
  0x25   :  { %v136_v2 = vld [vmem:[%s119_s17] sm:$0x1] }
  0x26   :  { %137 = vst [vmem:[#allocation2 + $0x2] sm:$0x1] %v136_v2 }
  0x27   :  { %155 = vsyncadd [#allocation4 + $0x2], 16  ;;  %s1305_s18 = sld [smem:[#allocation5 + $0x3]] }
  0x2d   :  { %s157_s21 = scalar_lea.vmem %s1636_s1, %s1305_s18 }
  0x2e   :  { %v174_v3 = vld [vmem:[%s157_s21] sm:$0x1] }
  0x2f   :  { %175 = vst [vmem:[#allocation2 + $0x3] sm:$0x1] %v174_v3 }
  0x30   :  { %193 = vsyncadd [#allocation4 + $0x3], 16  ;;  %s1306_s22 = sld [smem:[#allocation5 + $0x4]] }
  0x36   :  { %s195_s25 = scalar_lea.vmem %s1636_s1, %s1306_s22 }
  0x37   :  { %v212_v4 = vld [vmem:[%s195_s25] sm:$0x1] }
  0x38   :  { %213 = vst [vmem:[#allocation2 + $0x4] sm:$0x1] %v212_v4 }
  0x39   :  { %231 = vsyncadd [#allocation4 + $0x4], 16  ;;  %s1307_s26 = sld [smem:[#allocation5 + $0x5]] }
  0x3f   :  { %s233_s29 = scalar_lea.vmem %s1636_s1, %s1307_s26 }
  0x40   :  { %v250_v5 = vld [vmem:[%s233_s29] sm:$0x1] }
  0x41   :  { %251 = vst [vmem:[#allocation2 + $0x5] sm:$0x1] %v250_v5 }
  0x42   :  { %269 = vsyncadd [#allocation4 + $0x5], 16  ;;  %s1308_s30 = sld [smem:[#allocation5 + $0x6]] }
  0x48   :  { %s271_s8 = scalar_lea.vmem %s1636_s1, %s1308_s30 }
  0x49   :  { %v288_v6 = vld [vmem:[%s271_s8] sm:$0x1] }
  0x4a   :  { %289 = vst [vmem:[#allocation2 + $0x6] sm:$0x1] %v288_v6 }
  0x4b   :  { %307 = vsyncadd [#allocation4 + $0x6], 16  ;;  %s1309_s9 = sld [smem:[#allocation5 + $0x7]] }
  0x51   :  { %s309_s11 = scalar_lea.vmem %s1636_s1, %s1309_s9 }
  0x52   :  { %v326_v7 = vld [vmem:[%s309_s11] sm:$0x1] }
  0x53   :  { %327 = vst [vmem:[#allocation2 + $0x7] sm:$0x1] %v326_v7 }
  0x54   :  { %345 = vsyncadd [#allocation4 + $0x7], 16  ;;  %v1310_v8 = vld [vmem:[%s1637_s2 + $0x69] sm:$0x1] }
  0x55   :  { %363 = vst [vmem:[#allocation3] sm:$0x1] %v1310_v8 }
  0x56   :  { %381 = vsyncadd [#allocation4 + $0x8], 16  ;;  %v398_v9 = vld [vmem:[%s1638_s3] sm:$0x1] }
  0x57   :  { %399 = vst [vmem:[#allocation3 + $0x1] sm:$0x1] %v398_v9 }
  0x58   :  { %417 = vsyncadd [#allocation4 + $0x9], 16  ;;  %v1311_v10 = vld [vmem:[%s1638_s3 + $0x1] sm:$0x1] }
  0x59   :  { %436 = vst [vmem:[#allocation3 + $0x2] sm:$0x1] %v1311_v10 }
  0x5a   :  { %454 = vsyncadd [#allocation4 + $0xa], 16  ;;  %v1312_v11 = vld [vmem:[%s1639_s4 + $0xa] sm:$0x1] }
  0x5b   :  { %473 = vst [vmem:[#allocation3 + $0x3] sm:$0x1] %v1312_v11 }
  0x5c   :  { %491 = vsyncadd [#allocation4 + $0xb], 16 }
  0x5d   :  { %1435 = dma.done.wait [#allocation4], 16 }
  0x5e   :  { %1436 = vsyncadd [#allocation4], 4294967280 }
  0x5f   :  { %1437 = dma.done.wait [#allocation4 + $0x1], 16 }
  0x60   :  { %1438 = vsyncadd [#allocation4 + $0x1], 4294967280 }
  0x61   :  { %1439 = dma.done.wait [#allocation4 + $0x2], 16 }
  0x62   :  { %1440 = vsyncadd [#allocation4 + $0x2], 4294967280 }
  0x63   :  { %1441 = dma.done.wait [#allocation4 + $0x3], 16 }
  0x64   :  { %1442 = vsyncadd [#allocation4 + $0x3], 4294967280 }
  0x65   :  { %1443 = dma.done.wait [#allocation4 + $0x4], 16 }
  0x66   :  { %1444 = vsyncadd [#allocation4 + $0x4], 4294967280 }
  0x67   :  { %1445 = dma.done.wait [#allocation4 + $0x5], 16 }
  0x68   :  { %1446 = vsyncadd [#allocation4 + $0x5], 4294967280 }
  0x69   :  { %1447 = dma.done.wait [#allocation4 + $0x6], 16 }
  0x6a   :  { %1448 = vsyncadd [#allocation4 + $0x6], 4294967280 }
  0x6b   :  { %1449 = dma.done.wait [#allocation4 + $0x7], 16 }
  0x6c   :  { %1450 = vsyncadd [#allocation4 + $0x7], 4294967280 }
  0x6d   :  { %1451 = dma.done.wait [#allocation4 + $0x8], 16 }
  0x6e   :  { %1452 = vsyncadd [#allocation4 + $0x8], 4294967280 }
  0x6f   :  { %1453 = dma.done.wait [#allocation4 + $0x9], 16 }
  0x70   :  { %1454 = vsyncadd [#allocation4 + $0x9], 4294967280 }
  0x71   :  { %1455 = dma.done.wait [#allocation4 + $0xa], 16 }
  0x72   :  { %1456 = vsyncadd [#allocation4 + $0xa], 4294967280 }
  0x73   :  { %1457 = dma.done.wait [#allocation4 + $0xb], 16 }
  0x74   :  { %1458 = vsyncadd [#allocation4 + $0xb], 4294967280  ;;  %v518_v12 = vlaneseq  ;;  %v611_v13 = vld [vmem:[#allocation8 + $0xc0] sm:$0xff]  ;;  %v612_v14 = vld [vmem:[#allocation8 + $0xc8] sm:$0xff]  ;;  %vm549_vm4 = vcmask 261120  }
  0x75   :  { %v605_v15 = vld [vmem:[#allocation8 + $0x90] sm:$0xff]  ;;  %741 = vmatpush.msra.mxu0 %v611_v13  ;;  %761 = vmatpush.msra.mxu1 %v612_v14  ;;  %v606_v16 = vld [vmem:[#allocation8 + $0x98] sm:$0xff]  ;;  %v599_v17 = vld [vmem:[#allocation8 + $0x60] sm:$0xff] }
  0x76   :  { %v600_v18 = vld [vmem:[#allocation8 + $0x68] sm:$0xff]  ;;  %v517_v19 = vld [vmem:[#allocation2] sm:$0xff]  ;;  %v1540_v20 = vshrl.u32 %v518_v12, 7  ;;  %v521_v21 = vld [vmem:[#allocation3] sm:$0x1] }
  0x77   :  { %742 = vmatpush.msra.mxu0 %v605_v15  ;;  %762 = vmatpush.msra.mxu1 %v606_v16  ;;  %v528_v22 = vld [vmem:[#allocation3 + $0x1] sm:$0x1]  ;;  %v593_v23 = vld [vmem:[#allocation8 + $0x30] sm:$0xff]  ;;  %v520_v25 = vmul.f32 0.5, %v517_v19  ;;  %v522_v26 = vmul.f32 0.5, %v521_v21  ;;  %v608_v61 = vld [vmem:[#allocation8 + $0xa8] sm:$0xff] }
  0x78   :  { %v594_v24 = vld [vmem:[#allocation8 + $0x38] sm:$0xff]  ;;  %v529_v27 = vmul.f32 0.5, %v528_v22  ;;  %vm525_vm0 = vcmp.eq.s32.totalorder %v1540_v20, 2  ;;  %vm532_vm1 = vcmp.eq.s32.totalorder %v1540_v20, 3  ;;  %vm539_vm2 = vcmp.eq.s32.totalorder %v1540_v20, 4  ;;  %v613_v60 = vld [vmem:[#allocation8 + $0xd0] sm:$0xff] }
  0x79   :  { %743 = vmatpush.msra.mxu0 %v599_v17  ;;  %763 = vmatpush.msra.mxu1 %v600_v18  ;;  %v523_v28 = vperm.slane %v522_v26, 0  ;;  %v535_v29 = vld [vmem:[#allocation3 + $0x2] sm:$0x1]  ;;  %v542_v35 = vld [vmem:[#allocation3 + $0x3] sm:$0x1]  ;;  %vm546_vm3 = vcmp.eq.s32.totalorder %v1540_v20, 5 }
  0x7a   :  { %v530_v31 = vperm.slane %v529_v27, 0  ;;  %v536_v33 = vmul.f32 0.5, %v535_v29  ;;  %v543_v39 = vmul.f32 0.5, %v542_v35  ;;  %v614_v59 = vld [vmem:[#allocation8 + $0xd8] sm:$0xff]  ;;  %v607_v63 = vld [vmem:[#allocation8 + $0xa0] sm:$0xff]  ;;  %v601_v1 = vld [vmem:[#allocation8 + $0x70] sm:$0xff] }
  0x7b   :  { %744 = vmatpush.msra.mxu0 %v593_v23  ;;  %764 = vmatpush.msra.mxu1 %v594_v24  ;;  %v524_v30 = vadd.f32 %v523_v28, %v520_v25  ;;  %v602_v0 = vld [vmem:[#allocation8 + $0x78] sm:$0xff]  ;;  %v596_v4 = vld [vmem:[#allocation8 + $0x48] sm:$0xff]  ;;  %v595_v5 = vld [vmem:[#allocation8 + $0x40] sm:$0xff] }
  0x7c   :  { %v537_v37 = vperm.slane %v536_v33, 0  ;;  %v544_v42 = vperm.slane %v543_v39, 0  ;;  %v616_v23 = vld [vmem:[#allocation8 + $0xe8] sm:$0xff]  ;;  %v615_v24 = vld [vmem:[#allocation8 + $0xe0] sm:$0xff]  ;;  %v610_v25 = vld [vmem:[#allocation8 + $0xb8] sm:$0xff] }
  0x7d   :  { %v526_v32 = vsel %vm525_vm0, %v524_v30, %v517_v19  ;;  %801 = vmatpush.msrb.mxu1 %v614_v59  ;;  %781 = vmatpush.msrb.mxu0 %v613_v60  ;;  %v609_v26 = vld [vmem:[#allocation8 + $0xb0] sm:$0xff]  ;;  %v604_v27 = vld [vmem:[#allocation8 + $0x88] sm:$0xff]  ;;  %v603_v28 = vld [vmem:[#allocation8 + $0x80] sm:$0xff] }
  0x7e   :  { %v527_v34 = vmul.f32 0.5, %v526_v32  ;;  %v598_v29 = vld [vmem:[#allocation8 + $0x58] sm:$0xff]  ;;  %v597_v30 = vld [vmem:[#allocation8 + $0x50] sm:$0xff]  ;;  %v695_v35 = vld [vmem:[#allocation8 + $0x360] sm:$0xff] }
  0x7f   :  { %802 = vmatpush.msrb.mxu1 %v608_v61  ;;  %782 = vmatpush.msrb.mxu0 %v607_v63  ;;  %v701_v33 = vld [vmem:[#allocation8 + $0x390] sm:$0xff]  ;;  %v683_v39 = vld [vmem:[#allocation8 + $0x300] sm:$0xff]  ;;  %v710_v59 = vld [vmem:[#allocation8 + $0x3d8] sm:$0xff] }
  0x80   :  { %v531_v36 = vadd.f32 %v530_v31, %v527_v34  ;;  %v707_v31 = vld [vmem:[#allocation8 + $0x3c0] sm:$0xff]  ;;  %v702_v34 = vld [vmem:[#allocation8 + $0x398] sm:$0xff]  ;;  %v636_v61 = vld [vmem:[#allocation8 + $0x188] sm:$0xff] }
  0x81   :  { %803 = vmatpush.msrb.mxu1 %v602_v0  ;;  %783 = vmatpush.msrb.mxu0 %v601_v1  ;;  %v635_v60 = vld [vmem:[#allocation8 + $0x180] sm:$0xff]  ;;  %v704_v63 = vld [vmem:[#allocation8 + $0x3a8] sm:$0xff]  ;;  %v629_v1 = vld [vmem:[#allocation8 + $0x150] sm:$0xff] }
  0x82   :  { %v533_v38 = vsel %vm532_vm1, %v531_v36, %v526_v32  ;;  %v708_v32 = vld [vmem:[#allocation8 + $0x3c8] sm:$0xff]  ;;  %950 = vmatpush.msra.mxu2 %v707_v31 }
  0x83   :  { %v534_v40 = vmul.f32 0.5, %v533_v38  ;;  %804 = vmatpush.msrb.mxu1 %v596_v4  ;;  %784 = vmatpush.msrb.mxu0 %v595_v5  ;;  %v696_v36 = vld [vmem:[#allocation8 + $0x368] sm:$0xff]  ;;  %v698_v4 = vld [vmem:[#allocation8 + $0x378] sm:$0xff] }
  0x84   :  { %970 = vmatpush.msra.mxu3 %v708_v32  ;;  %951 = vmatpush.msra.mxu2 %v701_v33  ;;  %v700_v31 = vld [vmem:[#allocation8 + $0x388] sm:$0xff] }
  0x85   :  { %v538_v41 = vadd.f32 %v537_v37, %v534_v40  ;;  %v689_v37 = vld [vmem:[#allocation8 + $0x330] sm:$0xff]  ;;  %v684_v40 = vld [vmem:[#allocation8 + $0x308] sm:$0xff] }
  0x86   :  { %971 = vmatpush.msra.mxu3 %v702_v34  ;;  %952 = vmatpush.msra.mxu2 %v695_v35  ;;  %v667_v34 = vld [vmem:[#allocation8 + $0x280] sm:$0xff]  ;;  %v668_v35 = vld [vmem:[#allocation8 + $0x288] sm:$0xff] }
  0x87   :  { %v540_v43 = vsel %vm539_vm2, %v538_v41, %v533_v38  ;;  %v690_v38 = vld [vmem:[#allocation8 + $0x338] sm:$0xff]  ;;  %v677_v41 = vld [vmem:[#allocation8 + $0x2d0] sm:$0xff] }
  0x88   :  { %v541_v44 = vmul.f32 0.5, %v540_v43  ;;  %972 = vmatpush.msra.mxu3 %v696_v36  ;;  %953 = vmatpush.msra.mxu2 %v689_v37  ;;  %v693_v36 = vld [vmem:[#allocation8 + $0x350] sm:$0xff]  ;;  %v694_v37 = vld [vmem:[#allocation8 + $0x358] sm:$0xff] }
  0x8a   :  { %v545_v45 = vadd.f32 %v544_v42, %v541_v44  ;;  %973 = vmatpush.msra.mxu3 %v690_v38  ;;  %954 = vmatpush.msra.mxu2 %v683_v39  ;;  %v678_v42 = vld [vmem:[#allocation8 + $0x2d8] sm:$0xff]  ;;  %v672_v44 = vld [vmem:[#allocation8 + $0x2a8] sm:$0xff] }
  0x8c   :  { %v547_v46 = vsel %vm546_vm3, %v545_v45, %v540_v43  ;;  %974 = vmatpush.msra.mxu3 %v684_v40  ;;  %955 = vmatpush.msra.mxu2 %v677_v41  ;;  %v671_v43 = vld [vmem:[#allocation8 + $0x2a0] sm:$0xff]  ;;  %v665_v45 = vld [vmem:[#allocation8 + $0x270] sm:$0xff] }
  0x8d   :  { %v548_v47 = vmul.f32 %v547_v46, %v547_v46  ;;  %v661_v41 = vld [vmem:[#allocation8 + $0x250] sm:$0xff] }
  0x8e   :  { %975 = vmatpush.msra.mxu3 %v678_v42  ;;  %956 = vmatpush.msra.mxu2 %v671_v43  ;;  %v662_v42 = vld [vmem:[#allocation8 + $0x258] sm:$0xff] }
  0x8f   :  { %v550_v48 = vsel %vm549_vm4, %v548_v47, 0.0  ;;  %v659_v47 = vld [vmem:[#allocation8 + $0x240] sm:$0xff] }
  0x90   :  { %v551_v49 = vrot.slane %v550_v48, 4  ;;  %976 = vmatpush.msra.mxu3 %v672_v44  ;;  %957 = vmatpush.msra.mxu2 %v665_v45  ;;  %v687_v44 = vld [vmem:[#allocation8 + $0x320] sm:$0xff]  ;;  %v688_v45 = vld [vmem:[#allocation8 + $0x328] sm:$0xff] }
  0x92   :  { %v552_v50 = vadd.f32 %v551_v49, %v550_v48  ;;  %v660_v48 = vld [vmem:[#allocation8 + $0x248] sm:$0xff]  ;;  %958 = vmatpush.msra.mxu2 %v659_v47  ;;  %v653_v49 = vld [vmem:[#allocation8 + $0x210] sm:$0xff]  ;;  %v655_v47 = vld [vmem:[#allocation8 + $0x220] sm:$0xff] }
  0x94   :  { %v553_v51 = vrot.slane %v552_v50, 2  ;;  %959 = vmatpush.msra.mxu2 %v653_v49  ;;  %v681_v49 = vld [vmem:[#allocation8 + $0x2f0] sm:$0xff] }
  0x96   :  { %v554_v52 = vadd.f32 %v553_v51, %v552_v50  ;;  %v654_v50 = vld [vmem:[#allocation8 + $0x218] sm:$0xff] }
  0x97   :  { %v586_v51 = vld [vmem:[#allocation8] ss:$8 sm:$0xf] }
  0x98   :  { %v555_v53 = vrot.slane %v554_v52, 1 }
  0x9a   :  { %v556_v54 = vadd.f32 %v555_v53, %v554_v52  ;;  %v587_v52 = vld [vmem:[#allocation8] ss:$8 sm:$0x30] }
  0x9b   :  { %v647_v53 = vld [vmem:[#allocation8 + $0x1e0] sm:$0xff] }
  0x9c   :  { %1343 = vrsqrt.f32 %v556_v54  ;;  %vm564_vm5 = vcmp.eq.f32.partialorder %v556_v54, inf  ;;  %v567_v3 = vand.u32 2147483648, %v556_v54  ;;  %vm566_vm6 = vcmp.eq.f32.partialorder %v556_v54, 0.0  ;;  %960 = vmatpush.msra.mxu2 %v647_v53  ;;  %v675_v53 = vld [vmem:[#allocation8 + $0x2c0] sm:$0xff] }
  0xa2   :  { %v1344_v55 = vpop.eup %1343 }
  0xa3   :  { %v558_v56 = vmul.f32 %v1344_v55, %v556_v54 }
  0xa5   :  { %v559_v57 = vmul.f32 %v1344_v55, %v558_v56  ;;  %v641_v56 = vld [vmem:[#allocation8 + $0x1b0] sm:$0xff] }
  0xa6   :  { %961 = vmatpush.msra.mxu2 %v641_v56  ;;  %v676_v56 = vld [vmem:[#allocation8 + $0x2c8] sm:$0xff] }
  0xa7   :  { %v560_v58 = vmul.f32 0.5, %v559_v57  ;;  %v642_v57 = vld [vmem:[#allocation8 + $0x1b8] sm:$0xff] }
  0xa8   :  { %962 = vmatpush.msra.mxu2 %v635_v60  ;;  %v669_v60 = vld [vmem:[#allocation8 + $0x290] sm:$0xff] }
  0xa9   :  { %v561_v62 = vsub.f32 1.5, %v560_v58  ;;  %v709_v58 = vld [vmem:[#allocation8 + $0x3d0] sm:$0xff] }
  0xaa   :  { %963 = vmatpush.msra.mxu2 %v629_v1  ;;  %v638_v1 = vld [vmem:[#allocation8 + $0x198] sm:$0xff] }
  0xab   :  { %v562_v2 = vmul.f32 %v1344_v55, %v561_v62  ;;  %v1553_v55 = vor.u32 %v587_v52, %v586_v51  ;;  %v703_v62 = vld [vmem:[#allocation8 + $0x3a0] sm:$0xff]  ;;  %v649_v51 = vld [vmem:[#allocation8 + $0x1f0] sm:$0xff]  ;;  %v650_v52 = vld [vmem:[#allocation8 + $0x1f8] sm:$0xff] }
  0xad   :  { %v563_v6 = vmul.f32 %v562_v2, %v556_v54  ;;  %v714_v0 = vperm.slane %v1553_v55, 0  ;;  %v630_v2 = vld [vmem:[#allocation8 + $0x158] sm:$0xff] }
  0xaf   :  { %v565_v7 = vsel %vm564_vm5, %v556_v54, %v563_v6  ;;  %v648_v54 = vld [vmem:[#allocation8 + $0x1e8] sm:$0xff] }
  0xb0   :  { %v568_v8 = vsel %vm566_vm6, %v567_v3, %v565_v7  ;;  %v697_v3 = vld [vmem:[#allocation8 + $0x370] sm:$0xff]  ;;  %v623_v7 = vld [vmem:[#allocation8 + $0x120] sm:$0xff] }
  0xb1   :  { %v569_v9 = vmax.f32 %v568_v8, 1e-12  ;;  %v624_v8 = vld [vmem:[#allocation8 + $0x128] sm:$0xff]  ;;  %964 = vmatpush.msra.mxu2 %v623_v7  ;;  %v631_v7 = vld [vmem:[#allocation8 + $0x160] sm:$0xff] }
  0xb3   :  { %1345 = vrcp.f32 %v569_v9  ;;  %v581_v12 = vand.u32 2147483648, %v569_v9  ;;  %vm575_vm7 = vweird.f32 %v569_v9  ;;  %v579_v14 = vand.u32 2147483647, %v569_v9 }
  0xb5   :  { %v582_v16 = vor.u32 1.1754944e-38, %v581_v12  ;;  %vm580_vm10 = vcmp.eq.f32.partialorder %v579_v14, 8.507059e+37  ;;  %v617_v12 = vld [vmem:[#allocation8 + $0xf0] sm:$0xff] }
  0xb6   :  { %965 = vmatpush.msra.mxu2 %v617_v12  ;;  %v658_v12 = vld [vmem:[#allocation8 + $0x238] sm:$0xff] }
  0xb9   :  { %v1346_v10 = vpop.eup %1345 }
  0xba   :  { %v571_v11 = vmul.f32 %v1346_v10, %v569_v9  ;;  %vm576_vm8 = vweird.f32 %v1346_v10 }
  0xbb   :  { %vm577_vm9 = vmor %vm575_vm7, %vm576_vm8 }
  0xbc   :  { %v572_v13 = vsub.f32 1.0, %v571_v11  ;;  %v692_v11 = vld [vmem:[#allocation8 + $0x348] sm:$0xff] }
  0xbe   :  { %v573_v15 = vmul.f32 %v1346_v10, %v572_v13  ;;  %v618_v13 = vld [vmem:[#allocation8 + $0xf8] sm:$0xff] }
  0xc0   :  { %v574_v17 = vadd.f32 %v1346_v10, %v573_v15  ;;  %v685_v15 = vld [vmem:[#allocation8 + $0x310] sm:$0xff] }
  0xc2   :  { %v578_v18 = vsel %vm577_vm9, %v1346_v10, %v574_v17  ;;  %v691_v10 = vld [vmem:[#allocation8 + $0x340] sm:$0xff] }
  0xc3   :  { %v583_v19 = vsel %vm580_vm10, %v582_v16, %v578_v18  ;;  %v686_v16 = vld [vmem:[#allocation8 + $0x318] sm:$0xff]  ;;  %v711_v17 = vld [vmem:[#allocation8 + $0x3e0] sm:$0xff]  ;;  %v712_v18 = vld [vmem:[#allocation8 + $0x3e8] sm:$0xff] }
  0xc4   :  { %v584_v21 = vmul.f32 %v583_v19, %v547_v46  ;;  %v666_v46 = vld [vmem:[#allocation8 + $0x278] sm:$0xff]  ;;  %v716_v19 = vperm.slane %v1553_v55, 2  ;;  %1030 = vmatpush.msrb.mxu2 %v711_v17  ;;  %v715_v17 = vperm.slane %v1553_v55, 1 }
  0xc5   :  { %977 = vmatpush.msra.mxu3 %v666_v46  ;;  %v719_v46 = vperm.slane %v1553_v55, 5 }
  0xc6   :  { %v585_v22 = vmax.f32 %v584_v21, 0.0  ;;  %v717_v21 = vperm.slane %v1553_v55, 3 }
  0xc7   :  { %978 = vmatpush.msra.mxu3 %v660_v48  ;;  %v656_v48 = vld [vmem:[#allocation8 + $0x228] sm:$0xff] }
  0xc8   :  { %1313 = vmatmul.msk.f32.vlgmr.msra.gmra.mxu0 %vm549_vm4, %v585_v22  ;;  %1314 = vmatmul.msk.f32.vlgmr.msra.gmra.mxu1 %vm549_vm4, %v585_v22 }
  0xc9   :  { %841 = vmatpush.msra.mxu1 %v616_v23  ;;  %821 = vmatpush.msra.mxu0 %v615_v24  ;;  %v680_v23 = vld [vmem:[#allocation8 + $0x2e8] sm:$0xff]  ;;  %v705_v24 = vld [vmem:[#allocation8 + $0x3b0] sm:$0xff] }
  0xca   :  { %979 = vmatpush.msra.mxu3 %v654_v50  ;;  %1031 = vmatpush.msrb.mxu2 %v705_v24  ;;  %v682_v50 = vld [vmem:[#allocation8 + $0x2f8] sm:$0xff] }
  0xcb   :  { %842 = vmatpush.msra.mxu1 %v610_v25  ;;  %822 = vmatpush.msra.mxu0 %v609_v26  ;;  %v706_v25 = vld [vmem:[#allocation8 + $0x3b8] sm:$0xff]  ;;  %v673_v26 = vld [vmem:[#allocation8 + $0x2b0] sm:$0xff] }
  0xcc   :  { %980 = vmatpush.msra.mxu3 %v648_v54  ;;  %v646_v24 = vld [vmem:[#allocation8 + $0x1d8] sm:$0xff] }
  0xcd   :  { %843 = vmatpush.msra.mxu1 %v604_v27  ;;  %823 = vmatpush.msra.mxu0 %v603_v28  ;;  %v674_v27 = vld [vmem:[#allocation8 + $0x2b8] sm:$0xff]  ;;  %v699_v28 = vld [vmem:[#allocation8 + $0x380] sm:$0xff] }
  0xce   :  { %981 = vmatpush.msra.mxu3 %v642_v57  ;;  %1032 = vmatpush.msrb.mxu2 %v699_v28 }
  0xcf   :  { %844 = vmatpush.msra.mxu1 %v598_v29  ;;  %824 = vmatpush.msra.mxu0 %v597_v30 }
  0xd0   :  { %1315 = vmatmul.msk.f32.vlgmr.msrb.gmra.mxu0 %vm549_vm4, %v585_v22  ;;  %1316 = vmatmul.msk.f32.vlgmr.msrb.gmra.mxu1 %vm549_vm4, %v585_v22 }
  0xd1   :  { %990 = vmatpush.msrb.mxu0 %v709_v58  ;;  %1010 = vmatpush.msrb.mxu1 %v710_v59  ;;  %v643_v58 = vld [vmem:[#allocation8 + $0x1c0] sm:$0xff]  ;;  %v644_v59 = vld [vmem:[#allocation8 + $0x1c8] sm:$0xff] }
  0xd2   :  { %982 = vmatpush.msra.mxu3 %v636_v61  ;;  %1033 = vmatpush.msrb.mxu2 %v693_v36  ;;  %v670_v61 = vld [vmem:[#allocation8 + $0x298] sm:$0xff] }
  0xd3   :  { %991 = vmatpush.msrb.mxu0 %v703_v62  ;;  %1011 = vmatpush.msrb.mxu1 %v704_v63 }
  0xd4   :  { %983 = vmatpush.msra.mxu3 %v630_v2  ;;  %1034 = vmatpush.msrb.mxu2 %v687_v44  ;;  %v663_v2 = vld [vmem:[#allocation8 + $0x260] sm:$0xff] }
  0xd5   :  { %992 = vmatpush.msrb.mxu0 %v697_v3  ;;  %1012 = vmatpush.msrb.mxu1 %v698_v4 }
  0xd6   :  { %984 = vmatpush.msra.mxu3 %v624_v8  ;;  %1035 = vmatpush.msrb.mxu2 %v681_v49  ;;  %v632_v8 = vld [vmem:[#allocation8 + $0x168] sm:$0xff] }
  0xd7   :  { %993 = vmatpush.msrb.mxu0 %v691_v10  ;;  %1013 = vmatpush.msrb.mxu1 %v692_v11  ;;  %v657_v11 = vld [vmem:[#allocation8 + $0x230] sm:$0xff] }
  0xd8   :  { %1318 = vmatmul.msk.f32.vlgmr.msra.gmra.mxu1 %vm549_vm4, %v585_v22  ;;  %1317 = vmatmul.msk.f32.vlgmr.msra.gmra.mxu0 %vm549_vm4, %v585_v22  ;;  %v679_v22 = vld [vmem:[#allocation8 + $0x2e0] sm:$0xff] }
  0xd9   :  { %985 = vmatpush.msra.mxu3 %v618_v13  ;;  %994 = vmatpush.msrb.mxu0 %v685_v15  ;;  %v625_v13 = vld [vmem:[#allocation8 + $0x130] sm:$0xff]  ;;  %v651_v15 = vld [vmem:[#allocation8 + $0x200] sm:$0xff] }
  0xda   :  { %1014 = vmatpush.msrb.mxu1 %v686_v16  ;;  %1036 = vmatpush.msrb.mxu2 %v675_v53 }
  0xdb   :  { %1050 = vmatpush.msrb.mxu3 %v712_v18  ;;  %995 = vmatpush.msrb.mxu0 %v679_v22  ;;  %v620_v22 = vld [vmem:[#allocation8 + $0x108] sm:$0xff] }
  0xdc   :  { %1015 = vmatpush.msrb.mxu1 %v680_v23  ;;  %1037 = vmatpush.msrb.mxu2 %v669_v60  ;;  %v645_v23 = vld [vmem:[#allocation8 + $0x1d0] sm:$0xff] }
  0xdd   :  { %1051 = vmatpush.msrb.mxu3 %v706_v25  ;;  %996 = vmatpush.msrb.mxu0 %v673_v26  ;;  %v718_v26 = vperm.slane %v1553_v55, 4 }
  0xde   :  { %1016 = vmatpush.msrb.mxu1 %v674_v27  ;;  %1038 = vmatpush.msrb.mxu2 %v663_v2 }
  0xdf   :  { %1052 = vmatpush.msrb.mxu3 %v700_v31  ;;  %997 = vmatpush.msrb.mxu0 %v667_v34  ;;  %v640_v31 = vld [vmem:[#allocation8 + $0x1a8] sm:$0xff]  ;;  %v633_v34 = vld [vmem:[#allocation8 + $0x170] sm:$0xff] }
  0xe0   :  { %1017 = vmatpush.msrb.mxu1 %v668_v35  ;;  %1039 = vmatpush.msrb.mxu2 %v657_v11  ;;  %v634_v35 = vld [vmem:[#allocation8 + $0x178] sm:$0xff] }
  0xe1   :  { %1053 = vmatpush.msrb.mxu3 %v694_v37  ;;  %998 = vmatpush.msrb.mxu0 %v661_v41 }
  0xe2   :  { %1018 = vmatpush.msrb.mxu1 %v662_v42  ;;  %1040 = vmatpush.msrb.mxu2 %v651_v15 }
  0xe3   :  { %1054 = vmatpush.msrb.mxu3 %v688_v45  ;;  %999 = vmatpush.msrb.mxu0 %v655_v47  ;;  %v622_v47 = vld [vmem:[#allocation8 + $0x118] sm:$0xff] }
  0xe4   :  { %1019 = vmatpush.msrb.mxu1 %v656_v48  ;;  %1041 = vmatpush.msrb.mxu2 %v645_v23 }
  0xe5   :  { %1055 = vmatpush.msrb.mxu3 %v682_v50  ;;  %1000 = vmatpush.msrb.mxu0 %v649_v51 }
  0xe6   :  { %1020 = vmatpush.msrb.mxu1 %v650_v52 }
  0xe7   :  { %1056 = vmatpush.msrb.mxu3 %v676_v56  ;;  %1001 = vmatpush.msrb.mxu0 %v643_v58 }
  0xe8   :  { %1021 = vmatpush.msrb.mxu1 %v644_v59 }
  0xe9   :  { %1057 = vmatpush.msrb.mxu3 %v670_v61 }
  0xea   :  { %1022 = vmatpush.msrb.mxu1 %v638_v1 }
  0xec   :  { %1023 = vmatpush.msrb.mxu1 %v632_v8 }
 0x145   :  { %v746_v5 = vpop.f32.mrf.mxu0  ;;  %v1556_v6 = vpop.f32.mrf.mxu1 }
 0x146   :  { %v747_v9 = vadd.f32 %v746_v5, %v714_v0  ;;  %v637_v0 = vld [vmem:[#allocation8 + $0x190] sm:$0xff]  ;;  %v664_v5 = vld [vmem:[#allocation8 + $0x268] sm:$0xff] }
 0x147   :  { %1002 = vmatpush.msrb.mxu0 %v637_v0  ;;  %1058 = vmatpush.msrb.mxu3 %v664_v5 }
 0x148   :  { %v1319_v14 = vmul.f32 -1.442695, %v747_v9 }
 0x149   :  { %1003 = vmatpush.msrb.mxu0 %v631_v7  ;;  %1059 = vmatpush.msrb.mxu3 %v658_v12 }
 0x14a   :  { %1347 = vpow2.f32 %v1319_v14  ;;  %v626_v14 = vld [vmem:[#allocation8 + $0x138] sm:$0xff] }
 0x14b   :  { %1004 = vmatpush.msrb.mxu0 %v625_v13  ;;  %1024 = vmatpush.msrb.mxu1 %v626_v14 }
 0x14d   :  { %v786_v29 = vpop.f32.mrf.mxu0  ;;  %v806_v30 = vpop.f32.mrf.mxu1  ;;  %1025 = vmatpush.msrb.mxu1 %v620_v22 }
 0x14e   :  { %v787_v32 = vadd.f32 %v786_v29, %v716_v19  ;;  %v807_v33 = vadd.f32 %v806_v30, %v717_v21  ;;  %v652_v19 = vld [vmem:[#allocation8 + $0x208] sm:$0xff]  ;;  %v619_v21 = vld [vmem:[#allocation8 + $0x100] sm:$0xff]  ;;  %v767_v29 = vadd.f32 %v1556_v6, %v715_v17 }
 0x14f   :  { %1060 = vmatpush.msrb.mxu3 %v652_v19  ;;  %1005 = vmatpush.msrb.mxu0 %v619_v21  ;;  %v639_v30 = vld [vmem:[#allocation8 + $0x1a0] sm:$0xff] }
 0x150   :  { %v1348_v38 = vpop.eup %1347  ;;  %v1320_v39 = vmul.f32 -1.442695, %v787_v32  ;;  %v1321_v40 = vmul.f32 -1.442695, %v807_v33  ;;  %1042 = vmatpush.msrb.mxu2 %v639_v30 }
 0x151   :  { %v1560_v43 = vadd.f32 1.0, %v1348_v38  ;;  %1061 = vmatpush.msrb.mxu3 %v646_v24 }
 0x152   :  { %1349 = vpow2.f32 %v1320_v39  ;;  %v627_v39 = vld [vmem:[#allocation8 + $0x140] sm:$0xff]  ;;  %1043 = vmatpush.msrb.mxu2 %v633_v34 }
 0x153   :  { %1351 = vrcp.f32 %v1560_v43  ;;  %vm858_vm11 = vweird.f32 %v1560_v43  ;;  %v864_v36 = vand.u32 2147483648, %v1560_v43  ;;  %1062 = vmatpush.msrb.mxu3 %v640_v31  ;;  %v862_v38 = vand.u32 2147483647, %v1560_v43 }
 0x154   :  { %1353 = vpow2.f32 %v1321_v40  ;;  %v628_v40 = vld [vmem:[#allocation8 + $0x148] sm:$0xff]  ;;  %1044 = vmatpush.msrb.mxu2 %v627_v39 }
 0x155   :  { %v846_v54 = vpop.f32.mrf.mxu1  ;;  %v826_v27 = vpop.f32.mrf.mxu0  ;;  %1063 = vmatpush.msrb.mxu3 %v634_v35  ;;  %v865_v48 = vor.u32 1.1754944e-38, %v864_v36  ;;  %vm863_vm14 = vcmp.eq.f32.partialorder %v862_v38, 8.507059e+37 }
 0x156   :  { %v847_v57 = vadd.f32 %v846_v54, %v719_v46  ;;  %v827_v37 = vadd.f32 %v826_v27, %v718_v26  ;;  %v621_v46 = vld [vmem:[#allocation8 + $0x110] sm:$0xff]  ;;  %v591_v26 = vld [vmem:[#allocation8 + $0x1] ss:$8 sm:$0x30] }
 0x157   :  { %1064 = vmatpush.msrb.mxu3 %v628_v40  ;;  %1045 = vmatpush.msrb.mxu2 %v621_v46 }
 0x158   :  { %v1350_v62 = vpop.eup %1349  ;;  %v1322_v63 = vmul.f32 -1.442695, %v847_v57 }
 0x159   :  { %v1564_v3 = vpop.eup %1351  ;;  %v1566_v4 = vadd.f32 1.0, %v1350_v62  ;;  %1065 = vmatpush.msrb.mxu3 %v622_v47 }
 0x15a   :  { %v1354_v9 = vpop.eup %1353  ;;  %v854_v10 = vmul.f32 %v1564_v3, %v1560_v43  ;;  %1355 = vpow2.f32 %v1322_v63  ;;  %vm859_vm12 = vweird.f32 %v1564_v3 }
 0x15b   :  { %1357 = vrcp.f32 %v1566_v4  ;;  %v1572_v18 = vadd.f32 1.0, %v1354_v9  ;;  %vm1592_vm13 = vmor %vm858_vm11, %vm859_vm12  ;;  %vm878_vm2 = vweird.f32 %v1566_v4  ;;  %v884_v5 = vand.u32 2147483648, %v1566_v4 }
 0x15c   :  { %v855_v16 = vsub.f32 1.0, %v854_v10  ;;  %v882_v9 = vand.u32 2147483647, %v1566_v4  ;;  %vm933_vm11 = vcmp.eq.s32.totalorder %v1540_v20, 0 }
 0x15d   :  { %1359 = vrcp.f32 %v1572_v18  ;;  %v906_v51 = vand.u32 2147483648, %v1572_v18  ;;  %v904_v54 = vand.u32 2147483647, %v1572_v18  ;;  %vm900_vm0 = vweird.f32 %v1572_v18 }
 0x15e   :  { %v856_v25 = vmul.f32 %v1564_v3, %v855_v16  ;;  %v885_v14 = vor.u32 1.1754944e-38, %v884_v5  ;;  %vm883_vm9 = vcmp.eq.f32.partialorder %v882_v9, 8.507059e+37 }
 0x15f   :  { %v907_v63 = vor.u32 1.1754944e-38, %v906_v51  ;;  %vm905_vm4 = vcmp.eq.f32.partialorder %v904_v54, 8.507059e+37 }
 0x160   :  { %v1356_v28 = vpop.eup %1355  ;;  %v857_v33 = vadd.f32 %v1564_v3, %v856_v25  ;;  %v590_v25 = vld [vmem:[#allocation8 + $0x1] ss:$8 sm:$0xf] }
 0x161   :  { %v1578_v32 = vpop.eup %1357  ;;  %v1583_v55 = vadd.f32 1.0, %v1356_v28  ;;  %v592_v27 = vor.u32 %v591_v26, %v590_v25 }
 0x162   :  { %v874_v6 = vmul.f32 %v1578_v32, %v1566_v4  ;;  %v861_v44 = vsel %vm1592_vm13, %v1564_v3, %v857_v33  ;;  %vm879_vm3 = vweird.f32 %v1578_v32 }
 0x163   :  { %1361 = vrcp.f32 %v1583_v55  ;;  %v1360_v41 = vpop.eup %1359  ;;  %v866_v50 = vsel %vm863_vm14, %v865_v48, %v861_v44  ;;  %v926_v7 = vand.u32 2147483648, %v1583_v55  ;;  %vm880_vm6 = vmor %vm878_vm2, %vm879_vm3  ;;  %vm920_vm7 = vweird.f32 %v1583_v55 }
 0x164   :  { %1363 = vtanh.f32 %v767_v29  ;;  %v896_v45 = vmul.f32 %v1360_v41, %v1572_v18  ;;  %v875_v49 = vsub.f32 1.0, %v874_v6  ;;  %vm901_vm15 = vweird.f32 %v1360_v41 }
 0x165   :  { %1365 = vtanh.f32 %v827_v37  ;;  %vm902_vm1 = vmor %vm900_vm0, %vm901_vm15  ;;  %v924_v11 = vand.u32 2147483647, %v1583_v55  ;;  %v927_v15 = vor.u32 1.1754944e-38, %v926_v7  ;;  %v940_v28 = vperm.slane %v592_v27, 2 }
 0x166   :  { %v897_v43 = vsub.f32 1.0, %v896_v45  ;;  %v876_v57 = vmul.f32 %v1578_v32, %v875_v49  ;;  %v941_v29 = vperm.slane %v592_v27, 3  ;;  %v938_v33 = vperm.slane %v592_v27, 0 }
 0x167   :  { %vm925_vm10 = vcmp.eq.f32.partialorder %v924_v11, 8.507059e+37  ;;  %v939_v49 = vperm.slane %v592_v27, 1 }
 0x168   :  { %v898_v53 = vmul.f32 %v1360_v41, %v897_v43  ;;  %v877_v1 = vadd.f32 %v1578_v32, %v876_v57  ;;  %v942_v43 = vperm.slane %v592_v27, 4 }
 0x169   :  { %v1362_v52 = vpop.eup %1361 }
 0x16a   :  { %v1364_v56 = vpop.eup %1363  ;;  %v916_v58 = vmul.f32 %v1362_v52, %v1583_v55  ;;  %v899_v60 = vadd.f32 %v1360_v41, %v898_v53  ;;  %vm921_vm5 = vweird.f32 %v1362_v52  ;;  %v881_v12 = vsel %vm880_vm6, %v1578_v32, %v877_v1 }
 0x16b   :  { %v888_v59 = vmul.f32 %v1364_v56, %v866_v50  ;;  %v1366_v61 = vpop.eup %1365  ;;  %vm922_vm8 = vmor %vm920_vm7, %vm921_vm5  ;;  %v886_v17 = vsel %vm883_vm9, %v885_v14, %v881_v12 }
 0x16c   :  { %v917_v62 = vsub.f32 1.0, %v916_v58  ;;  %v903_v0 = vsel %vm902_vm1, %v1360_v41, %v899_v60  ;;  %v943_v41 = vperm.slane %v592_v27, 5 }
 0x16d   :  { %v908_v3 = vsel %vm905_vm4, %v907_v63, %v903_v0  ;;  %1367 = vtanh.f32 %v888_v59 }
 0x16e   :  { %v918_v2 = vmul.f32 %v1362_v52, %v917_v62  ;;  %v930_v8 = vmul.f32 %v1366_v61, %v908_v3 }
 0x170   :  { %v919_v10 = vadd.f32 %v1362_v52, %v918_v2  ;;  %1369 = vtanh.f32 %v930_v8 }
 0x172   :  { %v923_v13 = vsel %vm922_vm8, %v1362_v52, %v919_v10 }
 0x173   :  { %v1368_v16 = vpop.eup %1367  ;;  %v928_v18 = vsel %vm925_vm10, %v927_v15, %v923_v13 }
 0x174   :  { %v890_v4 = vmul.f32 %v1368_v16, %v886_v17 }
 0x176   :  { %v1370_v19 = vpop.eup %1369 }
 0x177   :  { %v932_v21 = vmul.f32 %v1370_v19, %v928_v18 }
 0x179   :  { %v934_v22 = vsel %vm933_vm11, %v932_v21, %v890_v4 }
 0x17a   :  { %v935_v23 = vmax.f32 %v934_v22, 0.0 }
 0x17c   :  { %v936_v24 = vmul.f32 2.0, %v935_v23 }
 0x17e   :  { %966 = vmatmul.f32.vlgmr.msra.gmra.mxu2 %v936_v24  ;;  %986 = vmatmul.f32.vlgmr.msra.gmra.mxu3 %v936_v24 }
 0x17f   :  { %1006 = vmatmul.f32.vlgmr.msrb.gmra.mxu0 %v936_v24  ;;  %1026 = vmatmul.f32.vlgmr.msrb.gmra.mxu1 %v936_v24 }
 0x186   :  { %1046 = vmatmul.f32.vlgmr.msrb.gmra.mxu2 %v936_v24  ;;  %1066 = vmatmul.f32.vlgmr.msrb.gmra.mxu3 %v936_v24 }
 0x1fc   :  { %v1007_v30 = vpop.f32.mrf.mxu0  ;;  %v1027_v31 = vpop.f32.mrf.mxu1 }
 0x1fd   :  { %v1008_v32 = vadd.f32 %v1007_v30, %v940_v28  ;;  %v1028_v20 = vadd.f32 %v1027_v31, %v941_v29 }
 0x1ff   :  { %v1324_v55 = vmul.f32 -1.442695, %v1008_v32  ;;  %v1325_v34 = vmul.f32 -1.442695, %v1028_v20 }
 0x201   :  { %1371 = vpow2.f32 %v1324_v55  ;;  %v967_v35 = vpop.f32.mrf.mxu2  ;;  %v987_v36 = vpop.f32.mrf.mxu3 }
 0x202   :  { %1373 = vpow2.f32 %v1325_v34  ;;  %v968_v6 = vadd.f32 %v967_v35, %v938_v33  ;;  %v988_v54 = vadd.f32 %v987_v36, %v939_v49 }
 0x204   :  { %v1323_v37 = vmul.f32 -1.442695, %v968_v6 }
 0x206   :  { %1375 = vpow2.f32 %v1323_v37 }
 0x207   :  { %v1372_v38 = vpop.eup %1371 }
 0x208   :  { %v1374_v39 = vpop.eup %1373  ;;  %v1615_v40 = vadd.f32 1.0, %v1372_v38 }
 0x209   :  { %v1115_v42 = vadd.f32 1.0, %v1374_v39  ;;  %v1067_v44 = vpop.f32.mrf.mxu3  ;;  %v1047_v51 = vpop.f32.mrf.mxu2 }
 0x20a   :  { %v1068_v46 = vadd.f32 %v1067_v44, %v943_v41  ;;  %v1048_v57 = vadd.f32 %v1047_v51, %v942_v43  ;;  %v1105_v25 = vand.u32 2147483648, %v1615_v40  ;;  %vm1099_vm5 = vweird.f32 %v1615_v40 }
 0x20b   :  { %1377 = vrcp.f32 %v1115_v42  ;;  %v1127_v60 = vand.u32 2147483648, %v1115_v42  ;;  %v1125_v0 = vand.u32 2147483647, %v1115_v42  ;;  %vm1121_vm13 = vweird.f32 %v1115_v42 }
 0x20c   :  { %v1376_v45 = vpop.eup %1375  ;;  %1379 = vrcp.f32 %v1615_v40  ;;  %v1326_v48 = vmul.f32 -1.442695, %v1068_v46  ;;  %v1103_v27 = vand.u32 2147483647, %v1615_v40  ;;  %v1106_v32 = vor.u32 1.1754944e-38, %v1105_v25 }
 0x20d   :  { %v1073_v47 = vadd.f32 1.0, %v1376_v45  ;;  %v1128_v8 = vor.u32 1.1754944e-38, %v1127_v60  ;;  %vm1126_vm0 = vcmp.eq.f32.partialorder %v1125_v0, 8.507059e+37 }
 0x20e   :  { %vm1104_vm9 = vcmp.eq.f32.partialorder %v1103_v27, 8.507059e+37 }
 0x20f   :  { %1381 = vrcp.f32 %v1073_v47  ;;  %v1085_v7 = vand.u32 2147483648, %v1073_v47  ;;  %v1083_v10 = vand.u32 2147483647, %v1073_v47  ;;  %vm1079_vm1 = vweird.f32 %v1073_v47 }
 0x210   :  { %1383 = vpow2.f32 %v1326_v48 }
 0x211   :  { %v1378_v50 = vpop.eup %1377  ;;  %1385 = vtanh.f32 %v988_v54  ;;  %v1086_v16 = vor.u32 1.1754944e-38, %v1085_v7  ;;  %vm1084_vm3 = vcmp.eq.f32.partialorder %v1083_v10, 8.507059e+37 }
 0x212   :  { %v1618_v52 = vpop.eup %1379  ;;  %v1117_v53 = vmul.f32 %v1378_v50, %v1115_v42  ;;  %vm1122_vm12 = vweird.f32 %v1378_v50  ;;  %1387 = vtanh.f32 %v1048_v57 }
 0x213   :  { %v1095_v59 = vmul.f32 %v1618_v52, %v1615_v40  ;;  %vm1123_vm14 = vmor %vm1121_vm13, %vm1122_vm12  ;;  %vm1100_vm4 = vweird.f32 %v1618_v52 }
 0x214   :  { %v1118_v56 = vsub.f32 1.0, %v1117_v53  ;;  %vm1101_vm6 = vmor %vm1099_vm5, %vm1100_vm4 }
 0x215   :  { %v1382_v58 = vpop.eup %1381  ;;  %v1096_v5 = vsub.f32 1.0, %v1095_v59 }
 0x216   :  { %v1384_v61 = vpop.eup %1383  ;;  %v1075_v62 = vmul.f32 %v1382_v58, %v1073_v47  ;;  %v1119_v63 = vmul.f32 %v1378_v50, %v1118_v56  ;;  %vm1080_vm15 = vweird.f32 %v1382_v58 }
 0x217   :  { %v1135_v1 = vadd.f32 1.0, %v1384_v61  ;;  %v1386_v14 = vpop.eup %1385  ;;  %v1097_v15 = vmul.f32 %v1618_v52, %v1096_v5  ;;  %vm1081_vm2 = vmor %vm1079_vm1, %vm1080_vm15 }
 0x218   :  { %v1076_v2 = vsub.f32 1.0, %v1075_v62  ;;  %v1120_v3 = vadd.f32 %v1378_v50, %v1119_v63  ;;  %v1388_v17 = vpop.eup %1387 }
 0x219   :  { %1389 = vrcp.f32 %v1135_v1  ;;  %v1098_v24 = vadd.f32 %v1618_v52, %v1097_v15  ;;  %v1147_v28 = vand.u32 2147483648, %v1135_v1  ;;  %v1145_v30 = vand.u32 2147483647, %v1135_v1 }
 0x21a   :  { %v1077_v9 = vmul.f32 %v1382_v58, %v1076_v2  ;;  %v1124_v11 = vsel %vm1123_vm14, %v1378_v50, %v1120_v3  ;;  %vm1141_vm8 = vweird.f32 %v1135_v1 }
 0x21b   :  { %v1129_v13 = vsel %vm1126_vm0, %v1128_v8, %v1124_v11  ;;  %v1102_v31 = vsel %vm1101_vm6, %v1618_v52, %v1098_v24  ;;  %v1148_v33 = vor.u32 1.1754944e-38, %v1147_v28  ;;  %vm1146_vm11 = vcmp.eq.f32.partialorder %v1145_v30, 8.507059e+37 }
 0x21c   :  { %v1078_v12 = vadd.f32 %v1382_v58, %v1077_v9  ;;  %v1151_v21 = vmul.f32 %v1388_v17, %v1129_v13  ;;  %v1107_v34 = vsel %vm1104_vm9, %v1106_v32, %v1102_v31 }
 0x21e   :  { %v1082_v18 = vsel %vm1081_vm2, %v1382_v58, %v1078_v12 }
 0x21f   :  { %v1390_v19 = vpop.eup %1389  ;;  %v1087_v4 = vsel %vm1084_vm3, %v1086_v16, %v1082_v18 }
 0x220   :  { %v1109_v22 = vmul.f32 %v1386_v14, %v1087_v4  ;;  %v1137_v23 = vmul.f32 %v1390_v19, %v1135_v1  ;;  %vm1142_vm7 = vweird.f32 %v1390_v19 }
 0x221   :  { %vm1143_vm10 = vmor %vm1141_vm8, %vm1142_vm7 }
 0x222   :  { %1391 = vtanh.f32 %v1109_v22  ;;  %v1138_v26 = vsub.f32 1.0, %v1137_v23 }
 0x223   :  { %1393 = vtanh.f32 %v1151_v21 }
 0x224   :  { %v1139_v29 = vmul.f32 %v1390_v19, %v1138_v26 }
 0x226   :  { %v1140_v20 = vadd.f32 %v1390_v19, %v1139_v29 }
 0x228   :  { %v1392_v55 = vpop.eup %1391  ;;  %v1144_v35 = vsel %vm1143_vm10, %v1390_v19, %v1140_v20 }
 0x229   :  { %v1394_v36 = vpop.eup %1393  ;;  %v1111_v6 = vmul.f32 %v1392_v55, %v1107_v34  ;;  %v1149_v37 = vsel %vm1146_vm11, %v1148_v33, %v1144_v35 }
 0x22a   :  { %v1153_v38 = vmul.f32 %v1394_v36, %v1149_v37 }
 0x22b   :  { %v1154_v39 = vmax.f32 %v1111_v6, 0.0 }
 0x22c   :  { %v1156_v40 = vmax.f32 %v1153_v38, 0.0 }
 0x22d   :  { %1155 = vst [vmem:[%s1641_s6 - $0x7] sm:$0x80] %v1154_v39 }
 0x22e   :  { %1157 = vst [vmem:[%s1641_s6 + $0x1] sm:$0x1] %v1156_v40 }
 0x22f   :  { %1162 = vsyncpa [#allocation6], 1 }
 0x230   :  { %1163 = vsyncpa [#allocation7], 1 }
 0x231   :  { %1164 = vsyncmov [#allocation4] }
 0x234   :  { %s1165_s20 = vpop.sfrf %1164 }
 0x235   :  { %p1327_p0 = scmp.ne.s32.totalorder %s1165_s20, 0 }
 0x237   :  { %1169 = shalt.err (%p1327_p0)  }
 0x238   :  { %1171 = vsyncmov [#allocation4 + $0x1] }
 0x23b   :  { %s1172_s21 = vpop.sfrf %1171 }
 0x23c   :  { %p1328_p1 = scmp.ne.s32.totalorder %s1172_s21, 0 }
 0x23e   :  { %1176 = shalt.err (%p1328_p1)  }
 0x23f   :  { %1178 = vsyncmov [#allocation4 + $0x2] }
 0x242   :  { %s1179_s22 = vpop.sfrf %1178 }
 0x243   :  { %p1329_p2 = scmp.ne.s32.totalorder %s1179_s22, 0 }
 0x245   :  { %1183 = shalt.err (%p1329_p2)  }
 0x246   :  { %1185 = vsyncmov [#allocation4 + $0x3] }
 0x249   :  { %s1186_s23 = vpop.sfrf %1185 }
 0x24a   :  { %p1330_p3 = scmp.ne.s32.totalorder %s1186_s23, 0 }
 0x24c   :  { %1190 = shalt.err (%p1330_p3)  }
 0x24d   :  { %1192 = vsyncmov [#allocation4 + $0x4] }
 0x250   :  { %s1193_s6 = vpop.sfrf %1192 }
 0x251   :  { %p1331_p4 = scmp.ne.s32.totalorder %s1193_s6, 0 }
 0x253   :  { %1197 = shalt.err (%p1331_p4)  }
 0x254   :  { %1199 = vsyncmov [#allocation4 + $0x5] }
 0x257   :  { %s1200_s24 = vpop.sfrf %1199 }
 0x258   :  { %p1332_p5 = scmp.ne.s32.totalorder %s1200_s24, 0 }
 0x25a   :  { %1204 = shalt.err (%p1332_p5)  }
 0x25b   :  { %1206 = vsyncmov [#allocation4 + $0x6] }
 0x25e   :  { %s1207_s25 = vpop.sfrf %1206 }
 0x25f   :  { %p1333_p6 = scmp.ne.s32.totalorder %s1207_s25, 0 }
 0x261   :  { %1211 = shalt.err (%p1333_p6)  }
 0x262   :  { %1213 = vsyncmov [#allocation4 + $0x7] }
 0x265   :  { %s1214_s26 = vpop.sfrf %1213 }
 0x266   :  { %p1334_p7 = scmp.ne.s32.totalorder %s1214_s26, 0 }
 0x268   :  { %1218 = shalt.err (%p1334_p7)  }
 0x269   :  { %1220 = vsyncmov [#allocation4 + $0x8] }
 0x26c   :  { %s1221_s27 = vpop.sfrf %1220 }
 0x26d   :  { %p1335_p8 = scmp.ne.s32.totalorder %s1221_s27, 0 }
 0x26f   :  { %1225 = shalt.err (%p1335_p8)  }
 0x270   :  { %1227 = vsyncmov [#allocation4 + $0x9] }
 0x273   :  { %s1228_s28 = vpop.sfrf %1227 }
 0x274   :  { %p1336_p9 = scmp.ne.s32.totalorder %s1228_s28, 0 }
 0x276   :  { %1232 = shalt.err (%p1336_p9)  }
 0x277   :  { %1234 = vsyncmov [#allocation4 + $0xa] }
 0x27a   :  { %s1235_s29 = vpop.sfrf %1234 }
 0x27b   :  { %p1337_p10 = scmp.ne.s32.totalorder %s1235_s29, 0 }
 0x27d   :  { %1239 = shalt.err (%p1337_p10)  }
 0x27e   :  { %1241 = vsyncmov [#allocation4 + $0xb] }
 0x281   :  { %s1242_s30 = vpop.sfrf %1241 }
 0x282   :  { %p1338_p11 = scmp.ne.s32.totalorder %s1242_s30, 0 }
 0x284   :  { %1246 = shalt.err (%p1338_p11)  }

</bundles_post_ra>
